<compile_context>
chip_gen: v7x
topology: tpu7x:2x2x1
jax: 0.10.0
libtpu: 0.0.40
codegen_flags: <defaults>
</compile_context>

<pallas_src>
import functools

import jax
import jax.numpy as jnp
from jax.experimental import pallas as pl
from jax.experimental.pallas import tpu as pltpu

_HIGHEST = jax.lax.Precision.HIGHEST


# --------------------------------------------------------------------------
# Chip-aware tuning helpers
# --------------------------------------------------------------------------

def _vmem_budget_bytes():
    """Usable VMEM budget for kernel buffers (~60% of physical if queryable)."""
    try:
        info = pltpu.get_tpu_info()
        cap = getattr(info, "vmem_capacity_bytes", None)
        if cap:
            return int(cap) * 3 // 5
    except Exception:
        pass
    # Safe default for v5e/v6e (128 MiB physical) and v7x (64 MiB physical).
    return 40 * 1024 * 1024


def _has_two_tensorcores():
    """v7x has 2 TensorCores per chip -> keep the direction axis 'parallel'."""
    try:
        dev = jax.devices()[0]
        if getattr(dev, "platform", "") != "tpu":
            return False
        return "v7" in getattr(dev, "device_kind", "").lower()
    except Exception:
        return False


def _max_chunk_for_vmem(B, H, stream_dtype, w_dtype, interleave, budget,
                        max_chunk=64):
    """Largest T_CHUNK whose (double-buffered) blocks fit the VMEM budget."""
    sb = jnp.dtype(stream_dtype).itemsize
    wb = jnp.dtype(w_dtype).itemsize
    ndir = 2 if interleave else 1
    # Per-timestep streaming blocks (gx in + h out), double-buffered; output
    # counted at 4 bytes (last layer emits the input dtype).
    per_t = 2 * ndir * B * (4 * H * sb + H * 4)
    # Resident blocks: W_hh (double-buffered), h0/c0/hT/cT blocks, f32 scratch.
    fixed = 2 * ndir * H * 4 * H * wb
    fixed += 6 * 2 * B * H * 4
    avail = budget - fixed
    if avail < per_t:
        return 1
    return int(min(max_chunk, avail // per_t))


def _choose_chunk(S, t_max):
    """Pick T_CHUNK: prefer a decent exact divisor of S, else pad S (masked)."""
    t_max = max(1, min(int(t_max), S))
    for t in range(t_max, 0, -1):
        if S % t == 0 and 4 * t >= t_max:     # accept divisors >= t_max/4
            return t, S
    t = t_max
    return t, -(-S // t) * t                  # pad S up to a multiple of t


def _auto_unroll(t_chunk, B, H):
    """The recurrence is serial, so unroll only removes loop overhead; cap it
    when live gate values (B x 4H f32 per step) would pressure the vregs."""
    if B * 4 * H <= 8192:          # gates fit in <= 8 vregs -> full unroll
        return t_chunk
    for u in (8, 4, 2, 1):
        if t_chunk % u == 0:
            return u
    return 1


# --------------------------------------------------------------------------
# LSTM cell (shared by both kernel variants)
# --------------------------------------------------------------------------

def _lstm_cell(gx_row, h, c, w_hh, H):
    """One LSTM cell step.  gx_row: (B, 4H) precomputed input gates;
    h, c: (B, H) f32 carries; w_hh: (H, 4H) (bf16 or f32)."""
    gates = gx_row.astype(jnp.float32) + jnp.dot(
        h.astype(w_hh.dtype), w_hh, preferred_element_type=jnp.float32)
    # PyTorch gate order: i, f, g, o
    i_g = jax.nn.sigmoid(gates[:, 0 * H:1 * H])
    f_g = jax.nn.sigmoid(gates[:, 1 * H:2 * H])
    g_g = jnp.tanh(gates[:, 2 * H:3 * H])
    o_g = jax.nn.sigmoid(gates[:, 3 * H:4 * H])
    c_new = f_g * c + i_g * g_g
    h_new = o_g * jnp.tanh(c_new)
    return h_new, c_new


def _masked(m, new, old):
    """Arithmetic blend: keep `old` where the (scalar) mask m is 0."""
    return old + m * (new - old)


# --------------------------------------------------------------------------
# Kernel variant A: both directions interleaved per grid step (v5e / v6e)
# --------------------------------------------------------------------------

def _bilstm_interleaved_kernel(gx_f_ref, gx_b_ref, h0_ref, c0_ref, w_hh_ref,
                               out_f_ref, out_b_ref, hT_ref, cT_ref,
                               h_sc, c_sc,
                               *, t_chunk, hidden, num_chunks, seq_len, unroll):
    """grid = (num_chunks,); each step runs t_chunk timesteps of BOTH directions,
    interleaved, so the two independent chains hide each other's latency."""
    t = pl.program_id(0)
    H = hidden

    @pl.when(t == 0)
    def _():
        h_sc[...] = h0_ref[...].astype(jnp.float32)
        c_sc[...] = c0_ref[...].astype(jnp.float32)

    w_f = w_hh_ref[0]                     # (H, 4H), loaded once per chunk
    w_b = w_hh_ref[1]

    # Hoisted per-chunk index arithmetic (scalar unit, once per chunk).
    fwd_base = t * t_chunk                          # padded global time base
    bwd_base = (num_chunks - 1 - t) * t_chunk

    def step(i, carry):
        hf, cf, hb, cb = carry
        lb = t_chunk - 1 - i                        # backward local index
        hf_n, cf_n = _lstm_cell(gx_f_ref[i], hf, cf, w_f, H)
        hb_n, cb_n = _lstm_cell(gx_b_ref[lb], hb, cb, w_b, H)
        if seq_len is not None:                     # padded-tail masking
            mf = ((fwd_base + i) < seq_len).astype(jnp.float32)
            mb = ((bwd_base + lb) < seq_len).astype(jnp.float32)
            hf_n = _masked(mf, hf_n, hf); cf_n = _masked(mf, cf_n, cf)
            hb_n = _masked(mb, hb_n, hb); cb_n = _masked(mb, cb_n, cb)
        out_f_ref[i] = hf_n.astype(out_f_ref.dtype)
        out_b_ref[lb] = hb_n.astype(out_b_ref.dtype)
        return hf_n, cf_n, hb_n, cb_n

    hf, cf, hb, cb = jax.lax.fori_loop(
        0, t_chunk, step, (h_sc[0], c_sc[0], h_sc[1], c_sc[1]), unroll=unroll)
    h_sc[0] = hf; h_sc[1] = hb
    c_sc[0] = cf; c_sc[1] = cb

    @pl.when(t == num_chunks - 1)
    def _():
        hT_ref[0] = hf.astype(hT_ref.dtype)
        hT_ref[1] = hb.astype(hT_ref.dtype)
        cT_ref[0] = cf.astype(cT_ref.dtype)
        cT_ref[1] = cb.astype(cT_ref.dtype)


def _bilstm_layer_interleaved(gx, h0, c0, w_hh_t, out_dtype, t_chunk,
                              seq_len, unroll, vmem_limit):
    """gx: (2, S_pad, B, 4H); returns out_f, out_b (S_pad, B, H), hT, cT (2, B, H)."""
    _, S_pad, B, G4 = gx.shape
    H = G4 // 4
    nc = S_pad // t_chunk

    kernel = functools.partial(
        _bilstm_interleaved_kernel, t_chunk=t_chunk, hidden=H,
        num_chunks=nc, seq_len=seq_len, unroll=unroll)

    gxf_spec = pl.BlockSpec((None, t_chunk, B, 4 * H), lambda t: (0, t, 0, 0))
    gxb_spec = pl.BlockSpec((None, t_chunk, B, 4 * H),
                            lambda t: (1, nc - 1 - t, 0, 0))
    full2 = pl.BlockSpec((2, B, H), lambda t: (0, 0, 0))
    w_spec = pl.BlockSpec((2, H, 4 * H), lambda t: (0, 0, 0))
    outf_spec = pl.BlockSpec((t_chunk, B, H), lambda t: (t, 0, 0))
    outb_spec = pl.BlockSpec((t_chunk, B, H), lambda t: (nc - 1 - t, 0, 0))

    out_f, out_b, hT, cT = pl.pallas_call(
        kernel,
        out_shape=(jax.ShapeDtypeStruct((S_pad, B, H), out_dtype),
                   jax.ShapeDtypeStruct((S_pad, B, H), out_dtype),
                   jax.ShapeDtypeStruct((2, B, H), h0.dtype),
                   jax.ShapeDtypeStruct((2, B, H), c0.dtype)),
        grid_spec=pltpu.PrefetchScalarGridSpec(
            num_scalar_prefetch=0,
            grid=(nc,),
            in_specs=[gxf_spec, gxb_spec, full2, full2, w_spec],
            out_specs=[outf_spec, outb_spec, full2, full2],
            scratch_shapes=[pltpu.VMEM((2, B, H), jnp.float32),
                            pltpu.VMEM((2, B, H), jnp.float32)]),
        compiler_params=pltpu.CompilerParams(
            dimension_semantics=("arbitrary",),
            vmem_limit_bytes=vmem_limit),
    )(gx, gx, h0, c0, w_hh_t)
    return out_f, out_b, hT, cT


# --------------------------------------------------------------------------
# Kernel variant B: direction axis as a "parallel" grid dimension (v7x, 2 TCs)
# --------------------------------------------------------------------------

def _bilstm_dirpar_kernel(gx_ref, h0_ref, c0_ref, w_hh_ref,
                          out_ref, hT_ref, cT_ref,
                          h_sc, c_sc,
                          *, t_chunk, hidden, num_chunks, seq_len, unroll):
    """grid = (2, num_chunks); axis 0 (direction) is 'parallel' so each of the
    two TensorCores on v7x takes one direction."""
    d = pl.program_id(0)            # 0 = forward, 1 = backward
    t = pl.program_id(1)            # time-chunk index (sequential)
    H = hidden

    @pl.when(t == 0)
    def _():
        h_sc[...] = h0_ref[...].astype(jnp.float32)
        c_sc[...] = c0_ref[...].astype(jnp.float32)

    w_hh = w_hh_ref[...]            # (H, 4H)

    # Hoisted reversed-index arithmetic: li = base + stride * i
    base = d * (t_chunk - 1)
    stride = 1 - 2 * d
    if seq_len is not None:
        chunk_base = (t + d * (num_chunks - 1 - 2 * t)) * t_chunk

    def step(i, carry):
        h, c = carry
        li = base + stride * i
        h_n, c_n = _lstm_cell(gx_ref[li], h, c, w_hh, H)
        if seq_len is not None:
            m = ((chunk_base + li) < seq_len).astype(jnp.float32)
            h_n = _masked(m, h_n, h)
            c_n = _masked(m, c_n, c)
        out_ref[li] = h_n.astype(out_ref.dtype)
        return h_n, c_n

    h, c = jax.lax.fori_loop(0, t_chunk, step, (h_sc[...], c_sc[...]),
                             unroll=unroll)
    h_sc[...] = h
    c_sc[...] = c

    @pl.when(t == num_chunks - 1)
    def _():
        hT_ref[...] = h.astype(hT_ref.dtype)
        cT_ref[...] = c.astype(cT_ref.dtype)


def _bilstm_layer_dirpar(gx, h0, c0, w_hh_t, out_dtype, t_chunk,
                         seq_len, unroll, vmem_limit):
    _, S_pad, B, G4 = gx.shape
    H = G4 // 4
    nc = S_pad // t_chunk

    def time_map(d, t):
        # forward: chunk t; backward: chunk nc-1-t (reversed index_map -> no flips)
        return (d, t + d * (nc - 1 - 2 * t), 0, 0)

    def dir_map(d, t):
        return (d, 0, 0)

    kernel = functools.partial(
        _bilstm_dirpar_kernel, t_chunk=t_chunk, hidden=H,
        num_chunks=nc, seq_len=seq_len, unroll=unroll)

    out, hT, cT = pl.pallas_call(
        kernel,
        out_shape=(jax.ShapeDtypeStruct((2, S_pad, B, H), out_dtype),
                   jax.ShapeDtypeStruct((2, B, H), h0.dtype),
                   jax.ShapeDtypeStruct((2, B, H), c0.dtype)),
        grid_spec=pltpu.PrefetchScalarGridSpec(
            num_scalar_prefetch=0,
            grid=(2, nc),
            in_specs=[
                pl.BlockSpec((None, t_chunk, B, 4 * H), time_map),   # gx chunk
                pl.BlockSpec((None, B, H), dir_map),                 # h0
                pl.BlockSpec((None, B, H), dir_map),                 # c0
                pl.BlockSpec((None, H, 4 * H), dir_map),             # w_hh^T
            ],
            out_specs=[
                pl.BlockSpec((None, t_chunk, B, H), time_map),       # per-step h
                pl.BlockSpec((None, B, H), dir_map),                 # final h
                pl.BlockSpec((None, B, H), dir_map),                 # final c
            ],
            scratch_shapes=[pltpu.VMEM((B, H), jnp.float32),
                            pltpu.VMEM((B, H), jnp.float32)]),
        compiler_params=pltpu.CompilerParams(
            dimension_semantics=("parallel", "arbitrary"),
            vmem_limit_bytes=vmem_limit),
    )(gx, h0, c0, w_hh_t)
    return out[0], out[1], hT, cT


# --------------------------------------------------------------------------
# Full SeqEncoder forward (stacked bidirectional LSTM, eval semantics)
# --------------------------------------------------------------------------

def seq_encoder_forward(x, hidden_state, cell_state, params, *,
                        compute_dtype=jnp.bfloat16, t_chunk=None,
                        interleave_dirs=None, unroll=None):
    """x: (S, B, E); hidden_state/cell_state: (2*num_layers, B, H).
    params: per layer (w_ih_t (2, in_dim, 4H), w_hh_t (2, H, 4H), b (2, 4H))
    with b = bias_ih + bias_hh (PyTorch gate order i, f, g, o)."""
    S, B, E = x.shape
    num_layers = hidden_state.shape[0] // 2
    H = hidden_state.shape[-1]

    if interleave_dirs is None:
        # single-TC chips: interleave both directions inside one core;
        # v7x: split directions across the two TensorCores instead.
        interleave_dirs = not _has_two_tensorcores()

    use_lowp = jnp.dtype(compute_dtype) != jnp.dtype(jnp.float32)
    w_dtype = compute_dtype if use_lowp else jnp.float32

    budget = _vmem_budget_bytes()
    if t_chunk is None:
        t_max = _max_chunk_for_vmem(B, H, compute_dtype, w_dtype,
                                    interleave_dirs, budget)
        t_chunk, S_pad = _choose_chunk(S, t_max)
    else:
        S_pad = -(-S // t_chunk) * t_chunk
    padded = S_pad != S
    seq_len_arg = S if padded else None
    if unroll is None:
        unroll = _auto_unroll(t_chunk, B, H)
    vmem_limit = int(budget)

    layer_fn = (_bilstm_layer_interleaved if interleave_dirs
                else _bilstm_layer_dirpar)

    x_in = x
    if padded:
        x_in = jnp.concatenate(
            [x, jnp.zeros((S_pad - S, B, E), x.dtype)], axis=0)

    def _proj_first(xp, w_ih_t, b):
        if use_lowp:
            gx = jnp.einsum('sbd,kdg->ksbg',
                            xp.astype(compute_dtype),
                            w_ih_t.astype(compute_dtype),
                            preferred_element_type=jnp.float32)
        else:
            gx = jnp.einsum('sbd,kdg->ksbg', xp, w_ih_t, precision=_HIGHEST)
        return (gx + b[:, None, None, :]).astype(compute_dtype)

    def _proj_inner(of, ob, w_ih_t, b):
        w = w_ih_t.reshape(2, 2, H, 4 * H)       # [out_dir, in_dir, H, 4H]
        if use_lowp:
            gx = (jnp.einsum('sbh,khg->ksbg', of, w[:, 0].astype(compute_dtype),
                             preferred_element_type=jnp.float32)
                  + jnp.einsum('sbh,khg->ksbg', ob, w[:, 1].astype(compute_dtype),
                               preferred_element_type=jnp.float32))
        else:
            gx = (jnp.einsum('sbh,khg->ksbg', of, w[:, 0], precision=_HIGHEST)
                  + jnp.einsum('sbh,khg->ksbg', ob, w[:, 1], precision=_HIGHEST))
        return (gx + b[:, None, None, :]).astype(compute_dtype)

    h_finals, c_finals = [], []
    out_f = out_b = None
    for l in range(num_layers):
        w_ih_t, w_hh_t, b = params[l]
        gx = _proj_first(x_in, w_ih_t, b) if l == 0 else _proj_inner(
            out_f, out_b, w_ih_t, b)
        h0 = hidden_state[2 * l:2 * l + 2]
        c0 = cell_state[2 * l:2 * l + 2]
        w_hh = w_hh_t.astype(w_dtype)
        layer_out_dtype = x.dtype if l == num_layers - 1 else compute_dtype
        out_f, out_b, hT, cT = layer_fn(gx, h0, c0, w_hh, layer_out_dtype,
                                        t_chunk, seq_len_arg, unroll, vmem_limit)
        h_finals.append(hT)
        c_finals.append(cT)
        # (inter-layer dropout skipped: inference semantics)

    output = jnp.concatenate([out_f[:S], out_b[:S]], axis=-1)   # (S, B, 2H)
    final_h = jnp.concatenate(h_finals, axis=0)                 # (2L, B, H)
    final_c = jnp.concatenate(c_finals, axis=0)
    return output, (final_h, final_c)


# --------------------------------------------------------------------------
# Pure-JAX reference (for correctness check)
# --------------------------------------------------------------------------

def _ref_onedir(x, h0, c0, w_ih_t, w_hh_t, b):
    H = h0.shape[-1]

    def step(carry, x_t):
        h, c = carry
        gates = (jnp.dot(x_t, w_ih_t, precision=_HIGHEST)
                 + jnp.dot(h, w_hh_t, precision=_HIGHEST) + b)
        i_g = jax.nn.sigmoid(gates[:, 0 * H:1 * H])
        f_g = jax.nn.sigmoid(gates[:, 1 * H:2 * H])
        g_g = jnp.tanh(gates[:, 2 * H:3 * H])
        o_g = jax.nn.sigmoid(gates[:, 3 * H:4 * H])
        c_new = f_g * c + i_g * g_g
        h_new = o_g * jnp.tanh(c_new)
        return (h_new, c_new), h_new

    (hT, cT), outs = jax.lax.scan(step, (h0, c0), x)
    return outs, hT, cT


def _ref_forward(x, hidden_state, cell_state, params):
    num_layers = hidden_state.shape[0] // 2
    layer_in = x
    h_finals, c_finals = [], []
    for l in range(num_layers):
        w_ih_t, w_hh_t, b = params[l]
        dir_outs = []
        for d in range(2):
            xin = layer_in if d == 0 else jnp.flip(layer_in, axis=0)
            out, hT, cT = _ref_onedir(xin, hidden_state[2 * l + d],
                                      cell_state[2 * l + d],
                                      w_ih_t[d], w_hh_t[d], b[d])
            if d == 1:
                out = jnp.flip(out, axis=0)
            dir_outs.append(out)
            h_finals.append(hT)
            c_finals.append(cT)
        layer_in = jnp.concatenate(dir_outs, axis=-1)
    return layer_in, (jnp.stack(h_finals, 0), jnp.stack(c_finals, 0))


# --------------------------------------------------------------------------
# Deterministic parameter construction (PyTorch-style init)
# --------------------------------------------------------------------------

def make_params(key, embedding_dim, hidden_dim, num_layers):
    bound = 1.0 / jnp.sqrt(jnp.float32(hidden_dim))
    params = []
    for l in range(num_layers):
        in_dim = embedding_dim if l == 0 else 2 * hidden_dim
        w_ih_l, w_hh_l, b_l = [], [], []
        for _ in range(2):
            key, k1, k2, k3, k4 = jax.random.split(key, 5)
            w_ih = jax.random.uniform(k1, (4 * hidden_dim, in_dim),
                                      jnp.float32, -bound, bound)
            w_hh = jax.random.uniform(k2, (4 * hidden_dim, hidden_dim),
                                      jnp.float32, -bound, bound)
            b_ih = jax.random.uniform(k3, (4 * hidden_dim,),
                                      jnp.float32, -bound, bound)
            b_hh = jax.random.uniform(k4, (4 * hidden_dim,),
                                      jnp.float32, -bound, bound)
            w_ih_l.append(w_ih.T)
            w_hh_l.append(w_hh.T)
            b_l.append(b_ih + b_hh)
        params.append((jnp.stack(w_ih_l), jnp.stack(w_hh_l), jnp.stack(b_l)))
    return params, key


if __name__ == "__main__":
    SEQ, BATCH = 8, 2
    EMB, HID, NLAYERS = 16, 32, 2

    key = jax.random.PRNGKey(0)
    params, key = make_params(key, EMB, HID, NLAYERS)

    key, kx, kh, kc = jax.random.split(key, 4)
    x = jax.random.normal(kx, (SEQ, BATCH, EMB), jnp.float32)
    h0 = jax.random.normal(kh, (2 * NLAYERS, BATCH, HID), jnp.float32)
    c0 = jax.random.normal(kc, (2 * NLAYERS, BATCH, HID), jnp.float32)

    ref_out, (ref_hT, ref_cT) = _ref_forward(x, h0, c0, params)

    def check(out, hT, cT, r_out, r_hT, r_cT, atol, rtol, tag):
        out = jax.block_until_ready(out)
        hT = jax.block_until_ready(hT)
        cT = jax.block_until_ready(cT)
        assert out.shape == r_out.shape, tag
        assert hT.shape == r_hT.shape and cT.shape == r_cT.shape, tag
        assert jnp.allclose(out.astype(jnp.float32), r_out, atol=atol, rtol=rtol), tag
        assert jnp.allclose(hT.astype(jnp.float32), r_hT, atol=atol, rtol=rtol), tag
        assert jnp.allclose(cT.astype(jnp.float32), r_cT, atol=atol, rtol=rtol), tag

    # 1) f32 path (exact nn.LSTM semantics), both kernel variants.
    for il in (True, False):
        o, (h, c) = seq_encoder_forward(x, h0, c0, params,
                                        compute_dtype=jnp.float32,
                                        interleave_dirs=il)
        check(o, h, c, ref_out, ref_hT, ref_cT, 1e-4, 1e-4,
              f"f32 interleave={il}")

    # 2) bf16 fast path (default, chip-auto-selected variant); bf16-aware tolerance.
    o, (h, c) = seq_encoder_forward(x, h0, c0, params)
    check(o, h, c, ref_out, ref_hT, ref_cT, 1.5e-1, 1.5e-1, "bf16 auto")

    # 3) padded / masked path (S not divisible by the chunk), both variants.
    S2 = 7
    x2 = x[:S2]
    ref2, (rh2, rc2) = _ref_forward(x2, h0, c0, params)
    for il in (True, False):
        o2, (h2, c2) = seq_encoder_forward(x2, h0, c0, params,
                                           compute_dtype=jnp.float32,
                                           t_chunk=4, interleave_dirs=il)
        check(o2, h2, c2, ref2, rh2, rc2, 1e-4, 1e-4,
              f"padded f32 interleave={il}")

    print("KERNEL_OK")
</pallas_src>

<mosaic_0001>
module attributes {stable_mosaic.version = 11 : i64} {
  func.func @_bilstm_interleaved_kernel(%arg0: i32, %arg1: memref<1x8x2x128xf32, #tpu.memory_space<vmem>>, %arg2: memref<1x8x2x128xf32, #tpu.memory_space<vmem>>, %arg3: memref<2x2x32xf32, #tpu.memory_space<vmem>>, %arg4: memref<2x2x32xf32, #tpu.memory_space<vmem>>, %arg5: memref<2x32x128xf32, #tpu.memory_space<vmem>>, %arg6: memref<8x2x32xf32, #tpu.memory_space<vmem>>, %arg7: memref<8x2x32xf32, #tpu.memory_space<vmem>>, %arg8: memref<2x2x32xf32, #tpu.memory_space<vmem>>, %arg9: memref<2x2x32xf32, #tpu.memory_space<vmem>>, %arg10: memref<2x2x32xf32, #tpu.memory_space<vmem>>, %arg11: memref<2x2x32xf32, #tpu.memory_space<vmem>>) attributes {dimension_semantics = [#tpu.dimension_semantics<arbitrary>], iteration_bounds = array<i64: 1>, scalar_prefetch = 0 : i64, scratch_operands = 2 : i64, tpu.core_type = #tpu.core_type<tc>, window_params = [{transform_indices = @transform_0, window_bounds = array<i64: 1, 8, 2, 128>}, {transform_indices = @transform_1, window_bounds = array<i64: 1, 8, 2, 128>}, {pipeline_mode = #tpu.pipeline_mode<synchronous>, transform_indices = @transform_2, window_bounds = array<i64: 2, 2, 32>}, {pipeline_mode = #tpu.pipeline_mode<synchronous>, transform_indices = @transform_3, window_bounds = array<i64: 2, 2, 32>}, {pipeline_mode = #tpu.pipeline_mode<synchronous>, transform_indices = @transform_4, window_bounds = array<i64: 2, 32, 128>}, {transform_indices = @transform_5, window_bounds = array<i64: 8, 2, 32>}, {transform_indices = @transform_6, window_bounds = array<i64: 8, 2, 32>}, {pipeline_mode = #tpu.pipeline_mode<synchronous>, transform_indices = @transform_7, window_bounds = array<i64: 2, 2, 32>}, {pipeline_mode = #tpu.pipeline_mode<synchronous>, transform_indices = @transform_8, window_bounds = array<i64: 2, 2, 32>}]} {
    %c0_i32 = arith.constant 0 : i32
    %0 = arith.cmpi eq, %arg0, %c0_i32 : i32
    %1 = arith.extui %0 : i1 to i32
    %c0_i32_0 = arith.constant 0 : i32
    %2 = arith.cmpi ne, %1, %c0_i32_0 : i32
    scf.if %2 {
      %c0_183 = arith.constant 0 : index
      %c0_184 = arith.constant 0 : index
      %c0_185 = arith.constant 0 : index
      %582 = vector.load %arg3[%c0_183, %c0_184, %c0_185] : memref<2x2x32xf32, #tpu.memory_space<vmem>>, vector<2x2x32xf32>
      %c0_186 = arith.constant 0 : index
      %c0_187 = arith.constant 0 : index
      %c0_188 = arith.constant 0 : index
      %583 = vector.load %arg10[%c0_186, %c0_187, %c0_188] : memref<2x2x32xf32, #tpu.memory_space<vmem>>, vector<2x2x32xf32>
      tpu.vector_store %arg10[%c0_186, %c0_187, %c0_188], %582 {strides = array<i32>} : memref<2x2x32xf32, #tpu.memory_space<vmem>>, vector<2x2x32xf32>,
      %c0_189 = arith.constant 0 : index
      %c0_190 = arith.constant 0 : index
      %c0_191 = arith.constant 0 : index
      %584 = vector.load %arg4[%c0_189, %c0_190, %c0_191] : memref<2x2x32xf32, #tpu.memory_space<vmem>>, vector<2x2x32xf32>
      %c0_192 = arith.constant 0 : index
      %c0_193 = arith.constant 0 : index
      %c0_194 = arith.constant 0 : index
      %585 = vector.load %arg11[%c0_192, %c0_193, %c0_194] : memref<2x2x32xf32, #tpu.memory_space<vmem>>, vector<2x2x32xf32>
      tpu.vector_store %arg11[%c0_192, %c0_193, %c0_194], %584 {strides = array<i32>} : memref<2x2x32xf32, #tpu.memory_space<vmem>>, vector<2x2x32xf32>,
    } else {
    }
    %c0 = arith.constant 0 : index
    %c0_1 = arith.constant 0 : index
    %c0_2 = arith.constant 0 : index
    %3 = vector.load %arg5[%c0, %c0_1, %c0_2] : memref<2x32x128xf32, #tpu.memory_space<vmem>>, vector<1x32x128xf32>
    %4 = vector.shape_cast %3 : vector<1x32x128xf32> to vector<32x128xf32>
    %c1 = arith.constant 1 : index
    %c0_3 = arith.constant 0 : index
    %c0_4 = arith.constant 0 : index
    %5 = vector.load %arg5[%c1, %c0_3, %c0_4] : memref<2x32x128xf32, #tpu.memory_space<vmem>>, vector<1x32x128xf32>
    %6 = vector.shape_cast %5 : vector<1x32x128xf32> to vector<32x128xf32>
    %c0_5 = arith.constant 0 : index
    %c0_6 = arith.constant 0 : index
    %c0_7 = arith.constant 0 : index
    %7 = vector.load %arg10[%c0_5, %c0_6, %c0_7] : memref<2x2x32xf32, #tpu.memory_space<vmem>>, vector<1x2x32xf32>
    %8 = vector.shape_cast %7 : vector<1x2x32xf32> to vector<2x32xf32>
    %c0_8 = arith.constant 0 : index
    %c0_9 = arith.constant 0 : index
    %c0_10 = arith.constant 0 : index
    %9 = vector.load %arg11[%c0_8, %c0_9, %c0_10] : memref<2x2x32xf32, #tpu.memory_space<vmem>>, vector<1x2x32xf32>
    %10 = vector.shape_cast %9 : vector<1x2x32xf32> to vector<2x32xf32>
    %c1_11 = arith.constant 1 : index
    %c0_12 = arith.constant 0 : index
    %c0_13 = arith.constant 0 : index
    %11 = vector.load %arg10[%c1_11, %c0_12, %c0_13] : memref<2x2x32xf32, #tpu.memory_space<vmem>>, vector<1x2x32xf32>
    %12 = vector.shape_cast %11 : vector<1x2x32xf32> to vector<2x32xf32>
    %c1_14 = arith.constant 1 : index
    %c0_15 = arith.constant 0 : index
    %c0_16 = arith.constant 0 : index
    %13 = vector.load %arg11[%c1_14, %c0_15, %c0_16] : memref<2x2x32xf32, #tpu.memory_space<vmem>>, vector<1x2x32xf32>
    %14 = vector.shape_cast %13 : vector<1x2x32xf32> to vector<2x32xf32>
    %c0_i32_17 = arith.constant 0 : i32
    %c7_i32 = arith.constant 7 : i32
    %15 = arith.subi %c7_i32, %c0_i32_17 : i32
    %c0_18 = arith.constant 0 : index
    %16 = arith.index_cast %c0_i32_17 : i32 to index
    %c0_19 = arith.constant 0 : index
    %c0_20 = arith.constant 0 : index
    %17 = vector.load %arg1[%c0_18, %16, %c0_19, %c0_20] : memref<1x8x2x128xf32, #tpu.memory_space<vmem>>, vector<1x1x2x128xf32>
    %18 = vector.shape_cast %17 : vector<1x1x2x128xf32> to vector<2x128xf32>
    %cst = arith.constant dense<0.000000e+00> : vector<2x128xf32>
    %19 = tpu.matmul %8, %4, %cst {dimension_numbers = #tpu.dot_dimension_numbers<[1], [0], [0], [1], [0, 0, 1, 1], [], []>} : vector<2x32xf32>, vector<32x128xf32>, vector<2x128xf32> -> vector<2x128xf32>
    %20 = arith.addf %18, %19 : vector<2x128xf32>
    %21 = vector.extract_strided_slice %20 {offsets = [0, 0], sizes = [2, 32], strides = [1, 1]} : vector<2x128xf32> to vector<2x32xf32>
    %22 = arith.negf %21 : vector<2x32xf32>
    %23 = math.exp %22 : vector<2x32xf32>
    %cst_21 = arith.constant 1.000000e+00 : f32
    %24 = vector.broadcast %cst_21 : f32 to vector<2x32xf32>
    %25 = arith.addf %24, %23 : vector<2x32xf32>
    %26 = arith.divf %24, %25 : vector<2x32xf32>
    %27 = vector.extract_strided_slice %20 {offsets = [0, 32], sizes = [2, 32], strides = [1, 1]} : vector<2x128xf32> to vector<2x32xf32>
    %28 = arith.negf %27 : vector<2x32xf32>
    %29 = math.exp %28 : vector<2x32xf32>
    %cst_22 = arith.constant 1.000000e+00 : f32
    %30 = vector.broadcast %cst_22 : f32 to vector<2x32xf32>
    %31 = arith.addf %30, %29 : vector<2x32xf32>
    %32 = arith.divf %30, %31 : vector<2x32xf32>
    %33 = vector.extract_strided_slice %20 {offsets = [0, 64], sizes = [2, 32], strides = [1, 1]} : vector<2x128xf32> to vector<2x32xf32>
    %34 = math.tanh %33 : vector<2x32xf32>
    %35 = vector.extract_strided_slice %20 {offsets = [0, 96], sizes = [2, 32], strides = [1, 1]} : vector<2x128xf32> to vector<2x32xf32>
    %36 = arith.negf %35 : vector<2x32xf32>
    %37 = math.exp %36 : vector<2x32xf32>
    %cst_23 = arith.constant 1.000000e+00 : f32
    %38 = vector.broadcast %cst_23 : f32 to vector<2x32xf32>
    %39 = arith.addf %38, %37 : vector<2x32xf32>
    %40 = arith.divf %38, %39 : vector<2x32xf32>
    %41 = arith.mulf %32, %10 : vector<2x32xf32>
    %42 = arith.mulf %26, %34 : vector<2x32xf32>
    %43 = arith.addf %41, %42 : vector<2x32xf32>
    %44 = math.tanh %43 : vector<2x32xf32>
    %45 = arith.mulf %40, %44 : vector<2x32xf32>
    %c0_24 = arith.constant 0 : index
    %46 = arith.index_cast %15 : i32 to index
    %c0_25 = arith.constant 0 : index
    %c0_26 = arith.constant 0 : index
    %47 = vector.load %arg2[%c0_24, %46, %c0_25, %c0_26] : memref<1x8x2x128xf32, #tpu.memory_space<vmem>>, vector<1x1x2x128xf32>
    %48 = vector.shape_cast %47 : vector<1x1x2x128xf32> to vector<2x128xf32>
    %cst_27 = arith.constant dense<0.000000e+00> : vector<2x128xf32>
    %49 = tpu.matmul %12, %6, %cst_27 {dimension_numbers = #tpu.dot_dimension_numbers<[1], [0], [0], [1], [0, 0, 1, 1], [], []>} : vector<2x32xf32>, vector<32x128xf32>, vector<2x128xf32> -> vector<2x128xf32>
    %50 = arith.addf %48, %49 : vector<2x128xf32>
    %51 = vector.extract_strided_slice %50 {offsets = [0, 0], sizes = [2, 32], strides = [1, 1]} : vector<2x128xf32> to vector<2x32xf32>
    %52 = arith.negf %51 : vector<2x32xf32>
    %53 = math.exp %52 : vector<2x32xf32>
    %cst_28 = arith.constant 1.000000e+00 : f32
    %54 = vector.broadcast %cst_28 : f32 to vector<2x32xf32>
    %55 = arith.addf %54, %53 : vector<2x32xf32>
    %56 = arith.divf %54, %55 : vector<2x32xf32>
    %57 = vector.extract_strided_slice %50 {offsets = [0, 32], sizes = [2, 32], strides = [1, 1]} : vector<2x128xf32> to vector<2x32xf32>
    %58 = arith.negf %57 : vector<2x32xf32>
    %59 = math.exp %58 : vector<2x32xf32>
    %cst_29 = arith.constant 1.000000e+00 : f32
    %60 = vector.broadcast %cst_29 : f32 to vector<2x32xf32>
    %61 = arith.addf %60, %59 : vector<2x32xf32>
    %62 = arith.divf %60, %61 : vector<2x32xf32>
    %63 = vector.extract_strided_slice %50 {offsets = [0, 64], sizes = [2, 32], strides = [1, 1]} : vector<2x128xf32> to vector<2x32xf32>
    %64 = math.tanh %63 : vector<2x32xf32>
    %65 = vector.extract_strided_slice %50 {offsets = [0, 96], sizes = [2, 32], strides = [1, 1]} : vector<2x128xf32> to vector<2x32xf32>
    %66 = arith.negf %65 : vector<2x32xf32>
    %67 = math.exp %66 : vector<2x32xf32>
    %cst_30 = arith.constant 1.000000e+00 : f32
    %68 = vector.broadcast %cst_30 : f32 to vector<2x32xf32>
    %69 = arith.addf %68, %67 : vector<2x32xf32>
    %70 = arith.divf %68, %69 : vector<2x32xf32>
    %71 = arith.mulf %62, %14 : vector<2x32xf32>
    %72 = arith.mulf %56, %64 : vector<2x32xf32>
    %73 = arith.addf %71, %72 : vector<2x32xf32>
    %74 = math.tanh %73 : vector<2x32xf32>
    %75 = arith.mulf %70, %74 : vector<2x32xf32>
    %76 = arith.index_cast %c0_i32_17 : i32 to index
    %c0_31 = arith.constant 0 : index
    %c0_32 = arith.constant 0 : index
    %77 = vector.load %arg6[%76, %c0_31, %c0_32] : memref<8x2x32xf32, #tpu.memory_space<vmem>>, vector<1x2x32xf32>
    %78 = vector.shape_cast %77 : vector<1x2x32xf32> to vector<2x32xf32>
    %79 = vector.shape_cast %45 : vector<2x32xf32> to vector<1x2x32xf32>
    tpu.vector_store %arg6[%76, %c0_31, %c0_32], %79 {strides = array<i32>} : memref<8x2x32xf32, #tpu.memory_space<vmem>>, vector<1x2x32xf32>,
    %80 = arith.index_cast %15 : i32 to index
    %c0_33 = arith.constant 0 : index
    %c0_34 = arith.constant 0 : index
    %81 = vector.load %arg7[%80, %c0_33, %c0_34] : memref<8x2x32xf32, #tpu.memory_space<vmem>>, vector<1x2x32xf32>
    %82 = vector.shape_cast %81 : vector<1x2x32xf32> to vector<2x32xf32>
    %83 = vector.shape_cast %75 : vector<2x32xf32> to vector<1x2x32xf32>
    tpu.vector_store %arg7[%80, %c0_33, %c0_34], %83 {strides = array<i32>} : memref<8x2x32xf32, #tpu.memory_space<vmem>>, vector<1x2x32xf32>,
    %c1_i32 = arith.constant 1 : i32
    %c7_i32_35 = arith.constant 7 : i32
    %84 = arith.subi %c7_i32_35, %c1_i32 : i32
    %c0_36 = arith.constant 0 : index
    %85 = arith.index_cast %c1_i32 : i32 to index
    %c0_37 = arith.constant 0 : index
    %c0_38 = arith.constant 0 : index
    %86 = vector.load %arg1[%c0_36, %85, %c0_37, %c0_38] : memref<1x8x2x128xf32, #tpu.memory_space<vmem>>, vector<1x1x2x128xf32>
    %87 = vector.shape_cast %86 : vector<1x1x2x128xf32> to vector<2x128xf32>
    %cst_39 = arith.constant dense<0.000000e+00> : vector<2x128xf32>
    %88 = tpu.matmul %45, %4, %cst_39 {dimension_numbers = #tpu.dot_dimension_numbers<[1], [0], [0], [1], [0, 0, 1, 1], [], []>} : vector<2x32xf32>, vector<32x128xf32>, vector<2x128xf32> -> vector<2x128xf32>
    %89 = arith.addf %87, %88 : vector<2x128xf32>
    %90 = vector.extract_strided_slice %89 {offsets = [0, 0], sizes = [2, 32], strides = [1, 1]} : vector<2x128xf32> to vector<2x32xf32>
    %91 = arith.negf %90 : vector<2x32xf32>
    %92 = math.exp %91 : vector<2x32xf32>
    %cst_40 = arith.constant 1.000000e+00 : f32
    %93 = vector.broadcast %cst_40 : f32 to vector<2x32xf32>
    %94 = arith.addf %93, %92 : vector<2x32xf32>
    %95 = arith.divf %93, %94 : vector<2x32xf32>
    %96 = vector.extract_strided_slice %89 {offsets = [0, 32], sizes = [2, 32], strides = [1, 1]} : vector<2x128xf32> to vector<2x32xf32>
    %97 = arith.negf %96 : vector<2x32xf32>
    %98 = math.exp %97 : vector<2x32xf32>
    %cst_41 = arith.constant 1.000000e+00 : f32
    %99 = vector.broadcast %cst_41 : f32 to vector<2x32xf32>
    %100 = arith.addf %99, %98 : vector<2x32xf32>
    %101 = arith.divf %99, %100 : vector<2x32xf32>
    %102 = vector.extract_strided_slice %89 {offsets = [0, 64], sizes = [2, 32], strides = [1, 1]} : vector<2x128xf32> to vector<2x32xf32>
    %103 = math.tanh %102 : vector<2x32xf32>
    %104 = vector.extract_strided_slice %89 {offsets = [0, 96], sizes = [2, 32], strides = [1, 1]} : vector<2x128xf32> to vector<2x32xf32>
    %105 = arith.negf %104 : vector<2x32xf32>
    %106 = math.exp %105 : vector<2x32xf32>
    %cst_42 = arith.constant 1.000000e+00 : f32
    %107 = vector.broadcast %cst_42 : f32 to vector<2x32xf32>
    %108 = arith.addf %107, %106 : vector<2x32xf32>
    %109 = arith.divf %107, %108 : vector<2x32xf32>
    %110 = arith.mulf %101, %43 : vector<2x32xf32>
    %111 = arith.mulf %95, %103 : vector<2x32xf32>
    %112 = arith.addf %110, %111 : vector<2x32xf32>
    %113 = math.tanh %112 : vector<2x32xf32>
    %114 = arith.mulf %109, %113 : vector<2x32xf32>
    %c0_43 = arith.constant 0 : index
    %115 = arith.index_cast %84 : i32 to index
    %c0_44 = arith.constant 0 : index
    %c0_45 = arith.constant 0 : index
    %116 = vector.load %arg2[%c0_43, %115, %c0_44, %c0_45] : memref<1x8x2x128xf32, #tpu.memory_space<vmem>>, vector<1x1x2x128xf32>
    %117 = vector.shape_cast %116 : vector<1x1x2x128xf32> to vector<2x128xf32>
    %cst_46 = arith.constant dense<0.000000e+00> : vector<2x128xf32>
    %118 = tpu.matmul %75, %6, %cst_46 {dimension_numbers = #tpu.dot_dimension_numbers<[1], [0], [0], [1], [0, 0, 1, 1], [], []>} : vector<2x32xf32>, vector<32x128xf32>, vector<2x128xf32> -> vector<2x128xf32>
    %119 = arith.addf %117, %118 : vector<2x128xf32>
    %120 = vector.extract_strided_slice %119 {offsets = [0, 0], sizes = [2, 32], strides = [1, 1]} : vector<2x128xf32> to vector<2x32xf32>
    %121 = arith.negf %120 : vector<2x32xf32>
    %122 = math.exp %121 : vector<2x32xf32>
    %cst_47 = arith.constant 1.000000e+00 : f32
    %123 = vector.broadcast %cst_47 : f32 to vector<2x32xf32>
    %124 = arith.addf %123, %122 : vector<2x32xf32>
    %125 = arith.divf %123, %124 : vector<2x32xf32>
    %126 = vector.extract_strided_slice %119 {offsets = [0, 32], sizes = [2, 32], strides = [1, 1]} : vector<2x128xf32> to vector<2x32xf32>
    %127 = arith.negf %126 : vector<2x32xf32>
    %128 = math.exp %127 : vector<2x32xf32>
    %cst_48 = arith.constant 1.000000e+00 : f32
    %129 = vector.broadcast %cst_48 : f32 to vector<2x32xf32>
    %130 = arith.addf %129, %128 : vector<2x32xf32>
    %131 = arith.divf %129, %130 : vector<2x32xf32>
    %132 = vector.extract_strided_slice %119 {offsets = [0, 64], sizes = [2, 32], strides = [1, 1]} : vector<2x128xf32> to vector<2x32xf32>
    %133 = math.tanh %132 : vector<2x32xf32>
    %134 = vector.extract_strided_slice %119 {offsets = [0, 96], sizes = [2, 32], strides = [1, 1]} : vector<2x128xf32> to vector<2x32xf32>
    %135 = arith.negf %134 : vector<2x32xf32>
    %136 = math.exp %135 : vector<2x32xf32>
    %cst_49 = arith.constant 1.000000e+00 : f32
    %137 = vector.broadcast %cst_49 : f32 to vector<2x32xf32>
    %138 = arith.addf %137, %136 : vector<2x32xf32>
    %139 = arith.divf %137, %138 : vector<2x32xf32>
    %140 = arith.mulf %131, %73 : vector<2x32xf32>
    %141 = arith.mulf %125, %133 : vector<2x32xf32>
    %142 = arith.addf %140, %141 : vector<2x32xf32>
    %143 = math.tanh %142 : vector<2x32xf32>
    %144 = arith.mulf %139, %143 : vector<2x32xf32>
    %145 = arith.index_cast %c1_i32 : i32 to index
    %c0_50 = arith.constant 0 : index
    %c0_51 = arith.constant 0 : index
    %146 = vector.load %arg6[%145, %c0_50, %c0_51] : memref<8x2x32xf32, #tpu.memory_space<vmem>>, vector<1x2x32xf32>
    %147 = vector.shape_cast %146 : vector<1x2x32xf32> to vector<2x32xf32>
    %148 = vector.shape_cast %114 : vector<2x32xf32> to vector<1x2x32xf32>
    tpu.vector_store %arg6[%145, %c0_50, %c0_51], %148 {strides = array<i32>} : memref<8x2x32xf32, #tpu.memory_space<vmem>>, vector<1x2x32xf32>,
    %149 = arith.index_cast %84 : i32 to index
    %c0_52 = arith.constant 0 : index
    %c0_53 = arith.constant 0 : index
    %150 = vector.load %arg7[%149, %c0_52, %c0_53] : memref<8x2x32xf32, #tpu.memory_space<vmem>>, vector<1x2x32xf32>
    %151 = vector.shape_cast %150 : vector<1x2x32xf32> to vector<2x32xf32>
    %152 = vector.shape_cast %144 : vector<2x32xf32> to vector<1x2x32xf32>
    tpu.vector_store %arg7[%149, %c0_52, %c0_53], %152 {strides = array<i32>} : memref<8x2x32xf32, #tpu.memory_space<vmem>>, vector<1x2x32xf32>,
    %c2_i32 = arith.constant 2 : i32
    %c7_i32_54 = arith.constant 7 : i32
    %153 = arith.subi %c7_i32_54, %c2_i32 : i32
    %c0_55 = arith.constant 0 : index
    %154 = arith.index_cast %c2_i32 : i32 to index
    %c0_56 = arith.constant 0 : index
    %c0_57 = arith.constant 0 : index
    %155 = vector.load %arg1[%c0_55, %154, %c0_56, %c0_57] : memref<1x8x2x128xf32, #tpu.memory_space<vmem>>, vector<1x1x2x128xf32>
    %156 = vector.shape_cast %155 : vector<1x1x2x128xf32> to vector<2x128xf32>
    %cst_58 = arith.constant dense<0.000000e+00> : vector<2x128xf32>
    %157 = tpu.matmul %114, %4, %cst_58 {dimension_numbers = #tpu.dot_dimension_numbers<[1], [0], [0], [1], [0, 0, 1, 1], [], []>} : vector<2x32xf32>, vector<32x128xf32>, vector<2x128xf32> -> vector<2x128xf32>
    %158 = arith.addf %156, %157 : vector<2x128xf32>
    %159 = vector.extract_strided_slice %158 {offsets = [0, 0], sizes = [2, 32], strides = [1, 1]} : vector<2x128xf32> to vector<2x32xf32>
    %160 = arith.negf %159 : vector<2x32xf32>
    %161 = math.exp %160 : vector<2x32xf32>
    %cst_59 = arith.constant 1.000000e+00 : f32
    %162 = vector.broadcast %cst_59 : f32 to vector<2x32xf32>
    %163 = arith.addf %162, %161 : vector<2x32xf32>
    %164 = arith.divf %162, %163 : vector<2x32xf32>
    %165 = vector.extract_strided_slice %158 {offsets = [0, 32], sizes = [2, 32], strides = [1, 1]} : vector<2x128xf32> to vector<2x32xf32>
    %166 = arith.negf %165 : vector<2x32xf32>
    %167 = math.exp %166 : vector<2x32xf32>
    %cst_60 = arith.constant 1.000000e+00 : f32
    %168 = vector.broadcast %cst_60 : f32 to vector<2x32xf32>
    %169 = arith.addf %168, %167 : vector<2x32xf32>
    %170 = arith.divf %168, %169 : vector<2x32xf32>
    %171 = vector.extract_strided_slice %158 {offsets = [0, 64], sizes = [2, 32], strides = [1, 1]} : vector<2x128xf32> to vector<2x32xf32>
    %172 = math.tanh %171 : vector<2x32xf32>
    %173 = vector.extract_strided_slice %158 {offsets = [0, 96], sizes = [2, 32], strides = [1, 1]} : vector<2x128xf32> to vector<2x32xf32>
    %174 = arith.negf %173 : vector<2x32xf32>
    %175 = math.exp %174 : vector<2x32xf32>
    %cst_61 = arith.constant 1.000000e+00 : f32
    %176 = vector.broadcast %cst_61 : f32 to vector<2x32xf32>
    %177 = arith.addf %176, %175 : vector<2x32xf32>
    %178 = arith.divf %176, %177 : vector<2x32xf32>
    %179 = arith.mulf %170, %112 : vector<2x32xf32>
    %180 = arith.mulf %164, %172 : vector<2x32xf32>
    %181 = arith.addf %179, %180 : vector<2x32xf32>
    %182 = math.tanh %181 : vector<2x32xf32>
    %183 = arith.mulf %178, %182 : vector<2x32xf32>
    %c0_62 = arith.constant 0 : index
    %184 = arith.index_cast %153 : i32 to index
    %c0_63 = arith.constant 0 : index
    %c0_64 = arith.constant 0 : index
    %185 = vector.load %arg2[%c0_62, %184, %c0_63, %c0_64] : memref<1x8x2x128xf32, #tpu.memory_space<vmem>>, vector<1x1x2x128xf32>
    %186 = vector.shape_cast %185 : vector<1x1x2x128xf32> to vector<2x128xf32>
    %cst_65 = arith.constant dense<0.000000e+00> : vector<2x128xf32>
    %187 = tpu.matmul %144, %6, %cst_65 {dimension_numbers = #tpu.dot_dimension_numbers<[1], [0], [0], [1], [0, 0, 1, 1], [], []>} : vector<2x32xf32>, vector<32x128xf32>, vector<2x128xf32> -> vector<2x128xf32>
    %188 = arith.addf %186, %187 : vector<2x128xf32>
    %189 = vector.extract_strided_slice %188 {offsets = [0, 0], sizes = [2, 32], strides = [1, 1]} : vector<2x128xf32> to vector<2x32xf32>
    %190 = arith.negf %189 : vector<2x32xf32>
    %191 = math.exp %190 : vector<2x32xf32>
    %cst_66 = arith.constant 1.000000e+00 : f32
    %192 = vector.broadcast %cst_66 : f32 to vector<2x32xf32>
    %193 = arith.addf %192, %191 : vector<2x32xf32>
    %194 = arith.divf %192, %193 : vector<2x32xf32>
    %195 = vector.extract_strided_slice %188 {offsets = [0, 32], sizes = [2, 32], strides = [1, 1]} : vector<2x128xf32> to vector<2x32xf32>
    %196 = arith.negf %195 : vector<2x32xf32>
    %197 = math.exp %196 : vector<2x32xf32>
    %cst_67 = arith.constant 1.000000e+00 : f32
    %198 = vector.broadcast %cst_67 : f32 to vector<2x32xf32>
    %199 = arith.addf %198, %197 : vector<2x32xf32>
    %200 = arith.divf %198, %199 : vector<2x32xf32>
    %201 = vector.extract_strided_slice %188 {offsets = [0, 64], sizes = [2, 32], strides = [1, 1]} : vector<2x128xf32> to vector<2x32xf32>
    %202 = math.tanh %201 : vector<2x32xf32>
    %203 = vector.extract_strided_slice %188 {offsets = [0, 96], sizes = [2, 32], strides = [1, 1]} : vector<2x128xf32> to vector<2x32xf32>
    %204 = arith.negf %203 : vector<2x32xf32>
    %205 = math.exp %204 : vector<2x32xf32>
    %cst_68 = arith.constant 1.000000e+00 : f32
    %206 = vector.broadcast %cst_68 : f32 to vector<2x32xf32>
    %207 = arith.addf %206, %205 : vector<2x32xf32>
    %208 = arith.divf %206, %207 : vector<2x32xf32>
    %209 = arith.mulf %200, %142 : vector<2x32xf32>
    %210 = arith.mulf %194, %202 : vector<2x32xf32>
    %211 = arith.addf %209, %210 : vector<2x32xf32>
    %212 = math.tanh %211 : vector<2x32xf32>
    %213 = arith.mulf %208, %212 : vector<2x32xf32>
    %214 = arith.index_cast %c2_i32 : i32 to index
    %c0_69 = arith.constant 0 : index
    %c0_70 = arith.constant 0 : index
    %215 = vector.load %arg6[%214, %c0_69, %c0_70] : memref<8x2x32xf32, #tpu.memory_space<vmem>>, vector<1x2x32xf32>
    %216 = vector.shape_cast %215 : vector<1x2x32xf32> to vector<2x32xf32>
    %217 = vector.shape_cast %183 : vector<2x32xf32> to vector<1x2x32xf32>
    tpu.vector_store %arg6[%214, %c0_69, %c0_70], %217 {strides = array<i32>} : memref<8x2x32xf32, #tpu.memory_space<vmem>>, vector<1x2x32xf32>,
    %218 = arith.index_cast %153 : i32 to index
    %c0_71 = arith.constant 0 : index
    %c0_72 = arith.constant 0 : index
    %219 = vector.load %arg7[%218, %c0_71, %c0_72] : memref<8x2x32xf32, #tpu.memory_space<vmem>>, vector<1x2x32xf32>
    %220 = vector.shape_cast %219 : vector<1x2x32xf32> to vector<2x32xf32>
    %221 = vector.shape_cast %213 : vector<2x32xf32> to vector<1x2x32xf32>
    tpu.vector_store %arg7[%218, %c0_71, %c0_72], %221 {strides = array<i32>} : memref<8x2x32xf32, #tpu.memory_space<vmem>>, vector<1x2x32xf32>,
    %c3_i32 = arith.constant 3 : i32
    %c7_i32_73 = arith.constant 7 : i32
    %222 = arith.subi %c7_i32_73, %c3_i32 : i32
    %c0_74 = arith.constant 0 : index
    %223 = arith.index_cast %c3_i32 : i32 to index
    %c0_75 = arith.constant 0 : index
    %c0_76 = arith.constant 0 : index
    %224 = vector.load %arg1[%c0_74, %223, %c0_75, %c0_76] : memref<1x8x2x128xf32, #tpu.memory_space<vmem>>, vector<1x1x2x128xf32>
    %225 = vector.shape_cast %224 : vector<1x1x2x128xf32> to vector<2x128xf32>
    %cst_77 = arith.constant dense<0.000000e+00> : vector<2x128xf32>
    %226 = tpu.matmul %183, %4, %cst_77 {dimension_numbers = #tpu.dot_dimension_numbers<[1], [0], [0], [1], [0, 0, 1, 1], [], []>} : vector<2x32xf32>, vector<32x128xf32>, vector<2x128xf32> -> vector<2x128xf32>
    %227 = arith.addf %225, %226 : vector<2x128xf32>
    %228 = vector.extract_strided_slice %227 {offsets = [0, 0], sizes = [2, 32], strides = [1, 1]} : vector<2x128xf32> to vector<2x32xf32>
    %229 = arith.negf %228 : vector<2x32xf32>
    %230 = math.exp %229 : vector<2x32xf32>
    %cst_78 = arith.constant 1.000000e+00 : f32
    %231 = vector.broadcast %cst_78 : f32 to vector<2x32xf32>
    %232 = arith.addf %231, %230 : vector<2x32xf32>
    %233 = arith.divf %231, %232 : vector<2x32xf32>
    %234 = vector.extract_strided_slice %227 {offsets = [0, 32], sizes = [2, 32], strides = [1, 1]} : vector<2x128xf32> to vector<2x32xf32>
    %235 = arith.negf %234 : vector<2x32xf32>
    %236 = math.exp %235 : vector<2x32xf32>
    %cst_79 = arith.constant 1.000000e+00 : f32
    %237 = vector.broadcast %cst_79 : f32 to vector<2x32xf32>
    %238 = arith.addf %237, %236 : vector<2x32xf32>
    %239 = arith.divf %237, %238 : vector<2x32xf32>
    %240 = vector.extract_strided_slice %227 {offsets = [0, 64], sizes = [2, 32], strides = [1, 1]} : vector<2x128xf32> to vector<2x32xf32>
    %241 = math.tanh %240 : vector<2x32xf32>
    %242 = vector.extract_strided_slice %227 {offsets = [0, 96], sizes = [2, 32], strides = [1, 1]} : vector<2x128xf32> to vector<2x32xf32>
    %243 = arith.negf %242 : vector<2x32xf32>
    %244 = math.exp %243 : vector<2x32xf32>
    %cst_80 = arith.constant 1.000000e+00 : f32
    %245 = vector.broadcast %cst_80 : f32 to vector<2x32xf32>
    %246 = arith.addf %245, %244 : vector<2x32xf32>
    %247 = arith.divf %245, %246 : vector<2x32xf32>
    %248 = arith.mulf %239, %181 : vector<2x32xf32>
    %249 = arith.mulf %233, %241 : vector<2x32xf32>
    %250 = arith.addf %248, %249 : vector<2x32xf32>
    %251 = math.tanh %250 : vector<2x32xf32>
    %252 = arith.mulf %247, %251 : vector<2x32xf32>
    %c0_81 = arith.constant 0 : index
    %253 = arith.index_cast %222 : i32 to index
    %c0_82 = arith.constant 0 : index
    %c0_83 = arith.constant 0 : index
    %254 = vector.load %arg2[%c0_81, %253, %c0_82, %c0_83] : memref<1x8x2x128xf32, #tpu.memory_space<vmem>>, vector<1x1x2x128xf32>
    %255 = vector.shape_cast %254 : vector<1x1x2x128xf32> to vector<2x128xf32>
    %cst_84 = arith.constant dense<0.000000e+00> : vector<2x128xf32>
    %256 = tpu.matmul %213, %6, %cst_84 {dimension_numbers = #tpu.dot_dimension_numbers<[1], [0], [0], [1], [0, 0, 1, 1], [], []>} : vector<2x32xf32>, vector<32x128xf32>, vector<2x128xf32> -> vector<2x128xf32>
    %257 = arith.addf %255, %256 : vector<2x128xf32>
    %258 = vector.extract_strided_slice %257 {offsets = [0, 0], sizes = [2, 32], strides = [1, 1]} : vector<2x128xf32> to vector<2x32xf32>
    %259 = arith.negf %258 : vector<2x32xf32>
    %260 = math.exp %259 : vector<2x32xf32>
    %cst_85 = arith.constant 1.000000e+00 : f32
    %261 = vector.broadcast %cst_85 : f32 to vector<2x32xf32>
    %262 = arith.addf %261, %260 : vector<2x32xf32>
    %263 = arith.divf %261, %262 : vector<2x32xf32>
    %264 = vector.extract_strided_slice %257 {offsets = [0, 32], sizes = [2, 32], strides = [1, 1]} : vector<2x128xf32> to vector<2x32xf32>
    %265 = arith.negf %264 : vector<2x32xf32>
    %266 = math.exp %265 : vector<2x32xf32>
    %cst_86 = arith.constant 1.000000e+00 : f32
    %267 = vector.broadcast %cst_86 : f32 to vector<2x32xf32>
    %268 = arith.addf %267, %266 : vector<2x32xf32>
    %269 = arith.divf %267, %268 : vector<2x32xf32>
    %270 = vector.extract_strided_slice %257 {offsets = [0, 64], sizes = [2, 32], strides = [1, 1]} : vector<2x128xf32> to vector<2x32xf32>
    %271 = math.tanh %270 : vector<2x32xf32>
    %272 = vector.extract_strided_slice %257 {offsets = [0, 96], sizes = [2, 32], strides = [1, 1]} : vector<2x128xf32> to vector<2x32xf32>
    %273 = arith.negf %272 : vector<2x32xf32>
    %274 = math.exp %273 : vector<2x32xf32>
    %cst_87 = arith.constant 1.000000e+00 : f32
    %275 = vector.broadcast %cst_87 : f32 to vector<2x32xf32>
    %276 = arith.addf %275, %274 : vector<2x32xf32>
    %277 = arith.divf %275, %276 : vector<2x32xf32>
    %278 = arith.mulf %269, %211 : vector<2x32xf32>
    %279 = arith.mulf %263, %271 : vector<2x32xf32>
    %280 = arith.addf %278, %279 : vector<2x32xf32>
    %281 = math.tanh %280 : vector<2x32xf32>
    %282 = arith.mulf %277, %281 : vector<2x32xf32>
    %283 = arith.index_cast %c3_i32 : i32 to index
    %c0_88 = arith.constant 0 : index
    %c0_89 = arith.constant 0 : index
    %284 = vector.load %arg6[%283, %c0_88, %c0_89] : memref<8x2x32xf32, #tpu.memory_space<vmem>>, vector<1x2x32xf32>
    %285 = vector.shape_cast %284 : vector<1x2x32xf32> to vector<2x32xf32>
    %286 = vector.shape_cast %252 : vector<2x32xf32> to vector<1x2x32xf32>
    tpu.vector_store %arg6[%283, %c0_88, %c0_89], %286 {strides = array<i32>} : memref<8x2x32xf32, #tpu.memory_space<vmem>>, vector<1x2x32xf32>,
    %287 = arith.index_cast %222 : i32 to index
    %c0_90 = arith.constant 0 : index
    %c0_91 = arith.constant 0 : index
    %288 = vector.load %arg7[%287, %c0_90, %c0_91] : memref<8x2x32xf32, #tpu.memory_space<vmem>>, vector<1x2x32xf32>
    %289 = vector.shape_cast %288 : vector<1x2x32xf32> to vector<2x32xf32>
    %290 = vector.shape_cast %282 : vector<2x32xf32> to vector<1x2x32xf32>
    tpu.vector_store %arg7[%287, %c0_90, %c0_91], %290 {strides = array<i32>} : memref<8x2x32xf32, #tpu.memory_space<vmem>>, vector<1x2x32xf32>,
    %c4_i32 = arith.constant 4 : i32
    %c7_i32_92 = arith.constant 7 : i32
    %291 = arith.subi %c7_i32_92, %c4_i32 : i32
    %c0_93 = arith.constant 0 : index
    %292 = arith.index_cast %c4_i32 : i32 to index
    %c0_94 = arith.constant 0 : index
    %c0_95 = arith.constant 0 : index
    %293 = vector.load %arg1[%c0_93, %292, %c0_94, %c0_95] : memref<1x8x2x128xf32, #tpu.memory_space<vmem>>, vector<1x1x2x128xf32>
    %294 = vector.shape_cast %293 : vector<1x1x2x128xf32> to vector<2x128xf32>
    %cst_96 = arith.constant dense<0.000000e+00> : vector<2x128xf32>
    %295 = tpu.matmul %252, %4, %cst_96 {dimension_numbers = #tpu.dot_dimension_numbers<[1], [0], [0], [1], [0, 0, 1, 1], [], []>} : vector<2x32xf32>, vector<32x128xf32>, vector<2x128xf32> -> vector<2x128xf32>
    %296 = arith.addf %294, %295 : vector<2x128xf32>
    %297 = vector.extract_strided_slice %296 {offsets = [0, 0], sizes = [2, 32], strides = [1, 1]} : vector<2x128xf32> to vector<2x32xf32>
    %298 = arith.negf %297 : vector<2x32xf32>
    %299 = math.exp %298 : vector<2x32xf32>
    %cst_97 = arith.constant 1.000000e+00 : f32
    %300 = vector.broadcast %cst_97 : f32 to vector<2x32xf32>
    %301 = arith.addf %300, %299 : vector<2x32xf32>
    %302 = arith.divf %300, %301 : vector<2x32xf32>
    %303 = vector.extract_strided_slice %296 {offsets = [0, 32], sizes = [2, 32], strides = [1, 1]} : vector<2x128xf32> to vector<2x32xf32>
    %304 = arith.negf %303 : vector<2x32xf32>
    %305 = math.exp %304 : vector<2x32xf32>
    %cst_98 = arith.constant 1.000000e+00 : f32
    %306 = vector.broadcast %cst_98 : f32 to vector<2x32xf32>
    %307 = arith.addf %306, %305 : vector<2x32xf32>
    %308 = arith.divf %306, %307 : vector<2x32xf32>
    %309 = vector.extract_strided_slice %296 {offsets = [0, 64], sizes = [2, 32], strides = [1, 1]} : vector<2x128xf32> to vector<2x32xf32>
    %310 = math.tanh %309 : vector<2x32xf32>
    %311 = vector.extract_strided_slice %296 {offsets = [0, 96], sizes = [2, 32], strides = [1, 1]} : vector<2x128xf32> to vector<2x32xf32>
    %312 = arith.negf %311 : vector<2x32xf32>
    %313 = math.exp %312 : vector<2x32xf32>
    %cst_99 = arith.constant 1.000000e+00 : f32
    %314 = vector.broadcast %cst_99 : f32 to vector<2x32xf32>
    %315 = arith.addf %314, %313 : vector<2x32xf32>
    %316 = arith.divf %314, %315 : vector<2x32xf32>
    %317 = arith.mulf %308, %250 : vector<2x32xf32>
    %318 = arith.mulf %302, %310 : vector<2x32xf32>
    %319 = arith.addf %317, %318 : vector<2x32xf32>
    %320 = math.tanh %319 : vector<2x32xf32>
    %321 = arith.mulf %316, %320 : vector<2x32xf32>
    %c0_100 = arith.constant 0 : index
    %322 = arith.index_cast %291 : i32 to index
    %c0_101 = arith.constant 0 : index
    %c0_102 = arith.constant 0 : index
    %323 = vector.load %arg2[%c0_100, %322, %c0_101, %c0_102] : memref<1x8x2x128xf32, #tpu.memory_space<vmem>>, vector<1x1x2x128xf32>
    %324 = vector.shape_cast %323 : vector<1x1x2x128xf32> to vector<2x128xf32>
    %cst_103 = arith.constant dense<0.000000e+00> : vector<2x128xf32>
    %325 = tpu.matmul %282, %6, %cst_103 {dimension_numbers = #tpu.dot_dimension_numbers<[1], [0], [0], [1], [0, 0, 1, 1], [], []>} : vector<2x32xf32>, vector<32x128xf32>, vector<2x128xf32> -> vector<2x128xf32>
    %326 = arith.addf %324, %325 : vector<2x128xf32>
    %327 = vector.extract_strided_slice %326 {offsets = [0, 0], sizes = [2, 32], strides = [1, 1]} : vector<2x128xf32> to vector<2x32xf32>
    %328 = arith.negf %327 : vector<2x32xf32>
    %329 = math.exp %328 : vector<2x32xf32>
    %cst_104 = arith.constant 1.000000e+00 : f32
    %330 = vector.broadcast %cst_104 : f32 to vector<2x32xf32>
    %331 = arith.addf %330, %329 : vector<2x32xf32>
    %332 = arith.divf %330, %331 : vector<2x32xf32>
    %333 = vector.extract_strided_slice %326 {offsets = [0, 32], sizes = [2, 32], strides = [1, 1]} : vector<2x128xf32> to vector<2x32xf32>
    %334 = arith.negf %333 : vector<2x32xf32>
    %335 = math.exp %334 : vector<2x32xf32>
    %cst_105 = arith.constant 1.000000e+00 : f32
    %336 = vector.broadcast %cst_105 : f32 to vector<2x32xf32>
    %337 = arith.addf %336, %335 : vector<2x32xf32>
    %338 = arith.divf %336, %337 : vector<2x32xf32>
    %339 = vector.extract_strided_slice %326 {offsets = [0, 64], sizes = [2, 32], strides = [1, 1]} : vector<2x128xf32> to vector<2x32xf32>
    %340 = math.tanh %339 : vector<2x32xf32>
    %341 = vector.extract_strided_slice %326 {offsets = [0, 96], sizes = [2, 32], strides = [1, 1]} : vector<2x128xf32> to vector<2x32xf32>
    %342 = arith.negf %341 : vector<2x32xf32>
    %343 = math.exp %342 : vector<2x32xf32>
    %cst_106 = arith.constant 1.000000e+00 : f32
    %344 = vector.broadcast %cst_106 : f32 to vector<2x32xf32>
    %345 = arith.addf %344, %343 : vector<2x32xf32>
    %346 = arith.divf %344, %345 : vector<2x32xf32>
    %347 = arith.mulf %338, %280 : vector<2x32xf32>
    %348 = arith.mulf %332, %340 : vector<2x32xf32>
    %349 = arith.addf %347, %348 : vector<2x32xf32>
    %350 = math.tanh %349 : vector<2x32xf32>
    %351 = arith.mulf %346, %350 : vector<2x32xf32>
    %352 = arith.index_cast %c4_i32 : i32 to index
    %c0_107 = arith.constant 0 : index
    %c0_108 = arith.constant 0 : index
    %353 = vector.load %arg6[%352, %c0_107, %c0_108] : memref<8x2x32xf32, #tpu.memory_space<vmem>>, vector<1x2x32xf32>
    %354 = vector.shape_cast %353 : vector<1x2x32xf32> to vector<2x32xf32>
    %355 = vector.shape_cast %321 : vector<2x32xf32> to vector<1x2x32xf32>
    tpu.vector_store %arg6[%352, %c0_107, %c0_108], %355 {strides = array<i32>} : memref<8x2x32xf32, #tpu.memory_space<vmem>>, vector<1x2x32xf32>,
    %356 = arith.index_cast %291 : i32 to index
    %c0_109 = arith.constant 0 : index
    %c0_110 = arith.constant 0 : index
    %357 = vector.load %arg7[%356, %c0_109, %c0_110] : memref<8x2x32xf32, #tpu.memory_space<vmem>>, vector<1x2x32xf32>
    %358 = vector.shape_cast %357 : vector<1x2x32xf32> to vector<2x32xf32>
    %359 = vector.shape_cast %351 : vector<2x32xf32> to vector<1x2x32xf32>
    tpu.vector_store %arg7[%356, %c0_109, %c0_110], %359 {strides = array<i32>} : memref<8x2x32xf32, #tpu.memory_space<vmem>>, vector<1x2x32xf32>,
    %c5_i32 = arith.constant 5 : i32
    %c7_i32_111 = arith.constant 7 : i32
    %360 = arith.subi %c7_i32_111, %c5_i32 : i32
    %c0_112 = arith.constant 0 : index
    %361 = arith.index_cast %c5_i32 : i32 to index
    %c0_113 = arith.constant 0 : index
    %c0_114 = arith.constant 0 : index
    %362 = vector.load %arg1[%c0_112, %361, %c0_113, %c0_114] : memref<1x8x2x128xf32, #tpu.memory_space<vmem>>, vector<1x1x2x128xf32>
    %363 = vector.shape_cast %362 : vector<1x1x2x128xf32> to vector<2x128xf32>
    %cst_115 = arith.constant dense<0.000000e+00> : vector<2x128xf32>
    %364 = tpu.matmul %321, %4, %cst_115 {dimension_numbers = #tpu.dot_dimension_numbers<[1], [0], [0], [1], [0, 0, 1, 1], [], []>} : vector<2x32xf32>, vector<32x128xf32>, vector<2x128xf32> -> vector<2x128xf32>
    %365 = arith.addf %363, %364 : vector<2x128xf32>
    %366 = vector.extract_strided_slice %365 {offsets = [0, 0], sizes = [2, 32], strides = [1, 1]} : vector<2x128xf32> to vector<2x32xf32>
    %367 = arith.negf %366 : vector<2x32xf32>
    %368 = math.exp %367 : vector<2x32xf32>
    %cst_116 = arith.constant 1.000000e+00 : f32
    %369 = vector.broadcast %cst_116 : f32 to vector<2x32xf32>
    %370 = arith.addf %369, %368 : vector<2x32xf32>
    %371 = arith.divf %369, %370 : vector<2x32xf32>
    %372 = vector.extract_strided_slice %365 {offsets = [0, 32], sizes = [2, 32], strides = [1, 1]} : vector<2x128xf32> to vector<2x32xf32>
    %373 = arith.negf %372 : vector<2x32xf32>
    %374 = math.exp %373 : vector<2x32xf32>
    %cst_117 = arith.constant 1.000000e+00 : f32
    %375 = vector.broadcast %cst_117 : f32 to vector<2x32xf32>
    %376 = arith.addf %375, %374 : vector<2x32xf32>
    %377 = arith.divf %375, %376 : vector<2x32xf32>
    %378 = vector.extract_strided_slice %365 {offsets = [0, 64], sizes = [2, 32], strides = [1, 1]} : vector<2x128xf32> to vector<2x32xf32>
    %379 = math.tanh %378 : vector<2x32xf32>
    %380 = vector.extract_strided_slice %365 {offsets = [0, 96], sizes = [2, 32], strides = [1, 1]} : vector<2x128xf32> to vector<2x32xf32>
    %381 = arith.negf %380 : vector<2x32xf32>
    %382 = math.exp %381 : vector<2x32xf32>
    %cst_118 = arith.constant 1.000000e+00 : f32
    %383 = vector.broadcast %cst_118 : f32 to vector<2x32xf32>
    %384 = arith.addf %383, %382 : vector<2x32xf32>
    %385 = arith.divf %383, %384 : vector<2x32xf32>
    %386 = arith.mulf %377, %319 : vector<2x32xf32>
    %387 = arith.mulf %371, %379 : vector<2x32xf32>
    %388 = arith.addf %386, %387 : vector<2x32xf32>
    %389 = math.tanh %388 : vector<2x32xf32>
    %390 = arith.mulf %385, %389 : vector<2x32xf32>
    %c0_119 = arith.constant 0 : index
    %391 = arith.index_cast %360 : i32 to index
    %c0_120 = arith.constant 0 : index
    %c0_121 = arith.constant 0 : index
    %392 = vector.load %arg2[%c0_119, %391, %c0_120, %c0_121] : memref<1x8x2x128xf32, #tpu.memory_space<vmem>>, vector<1x1x2x128xf32>
    %393 = vector.shape_cast %392 : vector<1x1x2x128xf32> to vector<2x128xf32>
    %cst_122 = arith.constant dense<0.000000e+00> : vector<2x128xf32>
    %394 = tpu.matmul %351, %6, %cst_122 {dimension_numbers = #tpu.dot_dimension_numbers<[1], [0], [0], [1], [0, 0, 1, 1], [], []>} : vector<2x32xf32>, vector<32x128xf32>, vector<2x128xf32> -> vector<2x128xf32>
    %395 = arith.addf %393, %394 : vector<2x128xf32>
    %396 = vector.extract_strided_slice %395 {offsets = [0, 0], sizes = [2, 32], strides = [1, 1]} : vector<2x128xf32> to vector<2x32xf32>
    %397 = arith.negf %396 : vector<2x32xf32>
    %398 = math.exp %397 : vector<2x32xf32>
    %cst_123 = arith.constant 1.000000e+00 : f32
    %399 = vector.broadcast %cst_123 : f32 to vector<2x32xf32>
    %400 = arith.addf %399, %398 : vector<2x32xf32>
    %401 = arith.divf %399, %400 : vector<2x32xf32>
    %402 = vector.extract_strided_slice %395 {offsets = [0, 32], sizes = [2, 32], strides = [1, 1]} : vector<2x128xf32> to vector<2x32xf32>
    %403 = arith.negf %402 : vector<2x32xf32>
    %404 = math.exp %403 : vector<2x32xf32>
    %cst_124 = arith.constant 1.000000e+00 : f32
    %405 = vector.broadcast %cst_124 : f32 to vector<2x32xf32>
    %406 = arith.addf %405, %404 : vector<2x32xf32>
    %407 = arith.divf %405, %406 : vector<2x32xf32>
    %408 = vector.extract_strided_slice %395 {offsets = [0, 64], sizes = [2, 32], strides = [1, 1]} : vector<2x128xf32> to vector<2x32xf32>
    %409 = math.tanh %408 : vector<2x32xf32>
    %410 = vector.extract_strided_slice %395 {offsets = [0, 96], sizes = [2, 32], strides = [1, 1]} : vector<2x128xf32> to vector<2x32xf32>
    %411 = arith.negf %410 : vector<2x32xf32>
    %412 = math.exp %411 : vector<2x32xf32>
    %cst_125 = arith.constant 1.000000e+00 : f32
    %413 = vector.broadcast %cst_125 : f32 to vector<2x32xf32>
    %414 = arith.addf %413, %412 : vector<2x32xf32>
    %415 = arith.divf %413, %414 : vector<2x32xf32>
    %416 = arith.mulf %407, %349 : vector<2x32xf32>
    %417 = arith.mulf %401, %409 : vector<2x32xf32>
    %418 = arith.addf %416, %417 : vector<2x32xf32>
    %419 = math.tanh %418 : vector<2x32xf32>
    %420 = arith.mulf %415, %419 : vector<2x32xf32>
    %421 = arith.index_cast %c5_i32 : i32 to index
    %c0_126 = arith.constant 0 : index
    %c0_127 = arith.constant 0 : index
    %422 = vector.load %arg6[%421, %c0_126, %c0_127] : memref<8x2x32xf32, #tpu.memory_space<vmem>>, vector<1x2x32xf32>
    %423 = vector.shape_cast %422 : vector<1x2x32xf32> to vector<2x32xf32>
    %424 = vector.shape_cast %390 : vector<2x32xf32> to vector<1x2x32xf32>
    tpu.vector_store %arg6[%421, %c0_126, %c0_127], %424 {strides = array<i32>} : memref<8x2x32xf32, #tpu.memory_space<vmem>>, vector<1x2x32xf32>,
    %425 = arith.index_cast %360 : i32 to index
    %c0_128 = arith.constant 0 : index
    %c0_129 = arith.constant 0 : index
    %426 = vector.load %arg7[%425, %c0_128, %c0_129] : memref<8x2x32xf32, #tpu.memory_space<vmem>>, vector<1x2x32xf32>
    %427 = vector.shape_cast %426 : vector<1x2x32xf32> to vector<2x32xf32>
    %428 = vector.shape_cast %420 : vector<2x32xf32> to vector<1x2x32xf32>
    tpu.vector_store %arg7[%425, %c0_128, %c0_129], %428 {strides = array<i32>} : memref<8x2x32xf32, #tpu.memory_space<vmem>>, vector<1x2x32xf32>,
    %c6_i32 = arith.constant 6 : i32
    %c7_i32_130 = arith.constant 7 : i32
    %429 = arith.subi %c7_i32_130, %c6_i32 : i32
    %c0_131 = arith.constant 0 : index
    %430 = arith.index_cast %c6_i32 : i32 to index
    %c0_132 = arith.constant 0 : index
    %c0_133 = arith.constant 0 : index
    %431 = vector.load %arg1[%c0_131, %430, %c0_132, %c0_133] : memref<1x8x2x128xf32, #tpu.memory_space<vmem>>, vector<1x1x2x128xf32>
    %432 = vector.shape_cast %431 : vector<1x1x2x128xf32> to vector<2x128xf32>
    %cst_134 = arith.constant dense<0.000000e+00> : vector<2x128xf32>
    %433 = tpu.matmul %390, %4, %cst_134 {dimension_numbers = #tpu.dot_dimension_numbers<[1], [0], [0], [1], [0, 0, 1, 1], [], []>} : vector<2x32xf32>, vector<32x128xf32>, vector<2x128xf32> -> vector<2x128xf32>
    %434 = arith.addf %432, %433 : vector<2x128xf32>
    %435 = vector.extract_strided_slice %434 {offsets = [0, 0], sizes = [2, 32], strides = [1, 1]} : vector<2x128xf32> to vector<2x32xf32>
    %436 = arith.negf %435 : vector<2x32xf32>
    %437 = math.exp %436 : vector<2x32xf32>
    %cst_135 = arith.constant 1.000000e+00 : f32
    %438 = vector.broadcast %cst_135 : f32 to vector<2x32xf32>
    %439 = arith.addf %438, %437 : vector<2x32xf32>
    %440 = arith.divf %438, %439 : vector<2x32xf32>
    %441 = vector.extract_strided_slice %434 {offsets = [0, 32], sizes = [2, 32], strides = [1, 1]} : vector<2x128xf32> to vector<2x32xf32>
    %442 = arith.negf %441 : vector<2x32xf32>
    %443 = math.exp %442 : vector<2x32xf32>
    %cst_136 = arith.constant 1.000000e+00 : f32
    %444 = vector.broadcast %cst_136 : f32 to vector<2x32xf32>
    %445 = arith.addf %444, %443 : vector<2x32xf32>
    %446 = arith.divf %444, %445 : vector<2x32xf32>
    %447 = vector.extract_strided_slice %434 {offsets = [0, 64], sizes = [2, 32], strides = [1, 1]} : vector<2x128xf32> to vector<2x32xf32>
    %448 = math.tanh %447 : vector<2x32xf32>
    %449 = vector.extract_strided_slice %434 {offsets = [0, 96], sizes = [2, 32], strides = [1, 1]} : vector<2x128xf32> to vector<2x32xf32>
    %450 = arith.negf %449 : vector<2x32xf32>
    %451 = math.exp %450 : vector<2x32xf32>
    %cst_137 = arith.constant 1.000000e+00 : f32
    %452 = vector.broadcast %cst_137 : f32 to vector<2x32xf32>
    %453 = arith.addf %452, %451 : vector<2x32xf32>
    %454 = arith.divf %452, %453 : vector<2x32xf32>
    %455 = arith.mulf %446, %388 : vector<2x32xf32>
    %456 = arith.mulf %440, %448 : vector<2x32xf32>
    %457 = arith.addf %455, %456 : vector<2x32xf32>
    %458 = math.tanh %457 : vector<2x32xf32>
    %459 = arith.mulf %454, %458 : vector<2x32xf32>
    %c0_138 = arith.constant 0 : index
    %460 = arith.index_cast %429 : i32 to index
    %c0_139 = arith.constant 0 : index
    %c0_140 = arith.constant 0 : index
    %461 = vector.load %arg2[%c0_138, %460, %c0_139, %c0_140] : memref<1x8x2x128xf32, #tpu.memory_space<vmem>>, vector<1x1x2x128xf32>
    %462 = vector.shape_cast %461 : vector<1x1x2x128xf32> to vector<2x128xf32>
    %cst_141 = arith.constant dense<0.000000e+00> : vector<2x128xf32>
    %463 = tpu.matmul %420, %6, %cst_141 {dimension_numbers = #tpu.dot_dimension_numbers<[1], [0], [0], [1], [0, 0, 1, 1], [], []>} : vector<2x32xf32>, vector<32x128xf32>, vector<2x128xf32> -> vector<2x128xf32>
    %464 = arith.addf %462, %463 : vector<2x128xf32>
    %465 = vector.extract_strided_slice %464 {offsets = [0, 0], sizes = [2, 32], strides = [1, 1]} : vector<2x128xf32> to vector<2x32xf32>
    %466 = arith.negf %465 : vector<2x32xf32>
    %467 = math.exp %466 : vector<2x32xf32>
    %cst_142 = arith.constant 1.000000e+00 : f32
    %468 = vector.broadcast %cst_142 : f32 to vector<2x32xf32>
    %469 = arith.addf %468, %467 : vector<2x32xf32>
    %470 = arith.divf %468, %469 : vector<2x32xf32>
    %471 = vector.extract_strided_slice %464 {offsets = [0, 32], sizes = [2, 32], strides = [1, 1]} : vector<2x128xf32> to vector<2x32xf32>
    %472 = arith.negf %471 : vector<2x32xf32>
    %473 = math.exp %472 : vector<2x32xf32>
    %cst_143 = arith.constant 1.000000e+00 : f32
    %474 = vector.broadcast %cst_143 : f32 to vector<2x32xf32>
    %475 = arith.addf %474, %473 : vector<2x32xf32>
    %476 = arith.divf %474, %475 : vector<2x32xf32>
    %477 = vector.extract_strided_slice %464 {offsets = [0, 64], sizes = [2, 32], strides = [1, 1]} : vector<2x128xf32> to vector<2x32xf32>
    %478 = math.tanh %477 : vector<2x32xf32>
    %479 = vector.extract_strided_slice %464 {offsets = [0, 96], sizes = [2, 32], strides = [1, 1]} : vector<2x128xf32> to vector<2x32xf32>
    %480 = arith.negf %479 : vector<2x32xf32>
    %481 = math.exp %480 : vector<2x32xf32>
    %cst_144 = arith.constant 1.000000e+00 : f32
    %482 = vector.broadcast %cst_144 : f32 to vector<2x32xf32>
    %483 = arith.addf %482, %481 : vector<2x32xf32>
    %484 = arith.divf %482, %483 : vector<2x32xf32>
    %485 = arith.mulf %476, %418 : vector<2x32xf32>
    %486 = arith.mulf %470, %478 : vector<2x32xf32>
    %487 = arith.addf %485, %486 : vector<2x32xf32>
    %488 = math.tanh %487 : vector<2x32xf32>
    %489 = arith.mulf %484, %488 : vector<2x32xf32>
    %490 = arith.index_cast %c6_i32 : i32 to index
    %c0_145 = arith.constant 0 : index
    %c0_146 = arith.constant 0 : index
    %491 = vector.load %arg6[%490, %c0_145, %c0_146] : memref<8x2x32xf32, #tpu.memory_space<vmem>>, vector<1x2x32xf32>
    %492 = vector.shape_cast %491 : vector<1x2x32xf32> to vector<2x32xf32>
    %493 = vector.shape_cast %459 : vector<2x32xf32> to vector<1x2x32xf32>
    tpu.vector_store %arg6[%490, %c0_145, %c0_146], %493 {strides = array<i32>} : memref<8x2x32xf32, #tpu.memory_space<vmem>>, vector<1x2x32xf32>,
    %494 = arith.index_cast %429 : i32 to index
    %c0_147 = arith.constant 0 : index
    %c0_148 = arith.constant 0 : index
    %495 = vector.load %arg7[%494, %c0_147, %c0_148] : memref<8x2x32xf32, #tpu.memory_space<vmem>>, vector<1x2x32xf32>
    %496 = vector.shape_cast %495 : vector<1x2x32xf32> to vector<2x32xf32>
    %497 = vector.shape_cast %489 : vector<2x32xf32> to vector<1x2x32xf32>
    tpu.vector_store %arg7[%494, %c0_147, %c0_148], %497 {strides = array<i32>} : memref<8x2x32xf32, #tpu.memory_space<vmem>>, vector<1x2x32xf32>,
    %c7_i32_149 = arith.constant 7 : i32
    %c7_i32_150 = arith.constant 7 : i32
    %498 = arith.subi %c7_i32_150, %c7_i32_149 : i32
    %c0_151 = arith.constant 0 : index
    %499 = arith.index_cast %c7_i32_149 : i32 to index
    %c0_152 = arith.constant 0 : index
    %c0_153 = arith.constant 0 : index
    %500 = vector.load %arg1[%c0_151, %499, %c0_152, %c0_153] : memref<1x8x2x128xf32, #tpu.memory_space<vmem>>, vector<1x1x2x128xf32>
    %501 = vector.shape_cast %500 : vector<1x1x2x128xf32> to vector<2x128xf32>
    %cst_154 = arith.constant dense<0.000000e+00> : vector<2x128xf32>
    %502 = tpu.matmul %459, %4, %cst_154 {dimension_numbers = #tpu.dot_dimension_numbers<[1], [0], [0], [1], [0, 0, 1, 1], [], []>} : vector<2x32xf32>, vector<32x128xf32>, vector<2x128xf32> -> vector<2x128xf32>
    %503 = arith.addf %501, %502 : vector<2x128xf32>
    %504 = vector.extract_strided_slice %503 {offsets = [0, 0], sizes = [2, 32], strides = [1, 1]} : vector<2x128xf32> to vector<2x32xf32>
    %505 = arith.negf %504 : vector<2x32xf32>
    %506 = math.exp %505 : vector<2x32xf32>
    %cst_155 = arith.constant 1.000000e+00 : f32
    %507 = vector.broadcast %cst_155 : f32 to vector<2x32xf32>
    %508 = arith.addf %507, %506 : vector<2x32xf32>
    %509 = arith.divf %507, %508 : vector<2x32xf32>
    %510 = vector.extract_strided_slice %503 {offsets = [0, 32], sizes = [2, 32], strides = [1, 1]} : vector<2x128xf32> to vector<2x32xf32>
    %511 = arith.negf %510 : vector<2x32xf32>
    %512 = math.exp %511 : vector<2x32xf32>
    %cst_156 = arith.constant 1.000000e+00 : f32
    %513 = vector.broadcast %cst_156 : f32 to vector<2x32xf32>
    %514 = arith.addf %513, %512 : vector<2x32xf32>
    %515 = arith.divf %513, %514 : vector<2x32xf32>
    %516 = vector.extract_strided_slice %503 {offsets = [0, 64], sizes = [2, 32], strides = [1, 1]} : vector<2x128xf32> to vector<2x32xf32>
    %517 = math.tanh %516 : vector<2x32xf32>
    %518 = vector.extract_strided_slice %503 {offsets = [0, 96], sizes = [2, 32], strides = [1, 1]} : vector<2x128xf32> to vector<2x32xf32>
    %519 = arith.negf %518 : vector<2x32xf32>
    %520 = math.exp %519 : vector<2x32xf32>
    %cst_157 = arith.constant 1.000000e+00 : f32
    %521 = vector.broadcast %cst_157 : f32 to vector<2x32xf32>
    %522 = arith.addf %521, %520 : vector<2x32xf32>
    %523 = arith.divf %521, %522 : vector<2x32xf32>
    %524 = arith.mulf %515, %457 : vector<2x32xf32>
    %525 = arith.mulf %509, %517 : vector<2x32xf32>
    %526 = arith.addf %524, %525 : vector<2x32xf32>
    %527 = math.tanh %526 : vector<2x32xf32>
    %528 = arith.mulf %523, %527 : vector<2x32xf32>
    %c0_158 = arith.constant 0 : index
    %529 = arith.index_cast %498 : i32 to index
    %c0_159 = arith.constant 0 : index
    %c0_160 = arith.constant 0 : index
    %530 = vector.load %arg2[%c0_158, %529, %c0_159, %c0_160] : memref<1x8x2x128xf32, #tpu.memory_space<vmem>>, vector<1x1x2x128xf32>
    %531 = vector.shape_cast %530 : vector<1x1x2x128xf32> to vector<2x128xf32>
    %cst_161 = arith.constant dense<0.000000e+00> : vector<2x128xf32>
    %532 = tpu.matmul %489, %6, %cst_161 {dimension_numbers = #tpu.dot_dimension_numbers<[1], [0], [0], [1], [0, 0, 1, 1], [], []>} : vector<2x32xf32>, vector<32x128xf32>, vector<2x128xf32> -> vector<2x128xf32>
    %533 = arith.addf %531, %532 : vector<2x128xf32>
    %534 = vector.extract_strided_slice %533 {offsets = [0, 0], sizes = [2, 32], strides = [1, 1]} : vector<2x128xf32> to vector<2x32xf32>
    %535 = arith.negf %534 : vector<2x32xf32>
    %536 = math.exp %535 : vector<2x32xf32>
    %cst_162 = arith.constant 1.000000e+00 : f32
    %537 = vector.broadcast %cst_162 : f32 to vector<2x32xf32>
    %538 = arith.addf %537, %536 : vector<2x32xf32>
    %539 = arith.divf %537, %538 : vector<2x32xf32>
    %540 = vector.extract_strided_slice %533 {offsets = [0, 32], sizes = [2, 32], strides = [1, 1]} : vector<2x128xf32> to vector<2x32xf32>
    %541 = arith.negf %540 : vector<2x32xf32>
    %542 = math.exp %541 : vector<2x32xf32>
    %cst_163 = arith.constant 1.000000e+00 : f32
    %543 = vector.broadcast %cst_163 : f32 to vector<2x32xf32>
    %544 = arith.addf %543, %542 : vector<2x32xf32>
    %545 = arith.divf %543, %544 : vector<2x32xf32>
    %546 = vector.extract_strided_slice %533 {offsets = [0, 64], sizes = [2, 32], strides = [1, 1]} : vector<2x128xf32> to vector<2x32xf32>
    %547 = math.tanh %546 : vector<2x32xf32>
    %548 = vector.extract_strided_slice %533 {offsets = [0, 96], sizes = [2, 32], strides = [1, 1]} : vector<2x128xf32> to vector<2x32xf32>
    %549 = arith.negf %548 : vector<2x32xf32>
    %550 = math.exp %549 : vector<2x32xf32>
    %cst_164 = arith.constant 1.000000e+00 : f32
    %551 = vector.broadcast %cst_164 : f32 to vector<2x32xf32>
    %552 = arith.addf %551, %550 : vector<2x32xf32>
    %553 = arith.divf %551, %552 : vector<2x32xf32>
    %554 = arith.mulf %545, %487 : vector<2x32xf32>
    %555 = arith.mulf %539, %547 : vector<2x32xf32>
    %556 = arith.addf %554, %555 : vector<2x32xf32>
    %557 = math.tanh %556 : vector<2x32xf32>
    %558 = arith.mulf %553, %557 : vector<2x32xf32>
    %559 = arith.index_cast %c7_i32_149 : i32 to index
    %c0_165 = arith.constant 0 : index
    %c0_166 = arith.constant 0 : index
    %560 = vector.load %arg6[%559, %c0_165, %c0_166] : memref<8x2x32xf32, #tpu.memory_space<vmem>>, vector<1x2x32xf32>
    %561 = vector.shape_cast %560 : vector<1x2x32xf32> to vector<2x32xf32>
    %562 = vector.shape_cast %528 : vector<2x32xf32> to vector<1x2x32xf32>
    tpu.vector_store %arg6[%559, %c0_165, %c0_166], %562 {strides = array<i32>} : memref<8x2x32xf32, #tpu.memory_space<vmem>>, vector<1x2x32xf32>,
    %563 = arith.index_cast %498 : i32 to index
    %c0_167 = arith.constant 0 : index
    %c0_168 = arith.constant 0 : index
    %564 = vector.load %arg7[%563, %c0_167, %c0_168] : memref<8x2x32xf32, #tpu.memory_space<vmem>>, vector<1x2x32xf32>
    %565 = vector.shape_cast %564 : vector<1x2x32xf32> to vector<2x32xf32>
    %566 = vector.shape_cast %558 : vector<2x32xf32> to vector<1x2x32xf32>
    tpu.vector_store %arg7[%563, %c0_167, %c0_168], %566 {strides = array<i32>} : memref<8x2x32xf32, #tpu.memory_space<vmem>>, vector<1x2x32xf32>,
    %c8_i32 = arith.constant 8 : i32
    %c0_169 = arith.constant 0 : index
    %c0_170 = arith.constant 0 : index
    %c0_171 = arith.constant 0 : index
    %567 = vector.load %arg10[%c0_169, %c0_170, %c0_171] : memref<2x2x32xf32, #tpu.memory_space<vmem>>, vector<1x2x32xf32>
    %568 = vector.shape_cast %567 : vector<1x2x32xf32> to vector<2x32xf32>
    %569 = vector.shape_cast %528 : vector<2x32xf32> to vector<1x2x32xf32>
    tpu.vector_store %arg10[%c0_169, %c0_170, %c0_171], %569 {strides = array<i32>} : memref<2x2x32xf32, #tpu.memory_space<vmem>>, vector<1x2x32xf32>,
    %c1_172 = arith.constant 1 : index
    %c0_173 = arith.constant 0 : index
    %c0_174 = arith.constant 0 : index
    %570 = vector.load %arg10[%c1_172, %c0_173, %c0_174] : memref<2x2x32xf32, #tpu.memory_space<vmem>>, vector<1x2x32xf32>
    %571 = vector.shape_cast %570 : vector<1x2x32xf32> to vector<2x32xf32>
    %572 = vector.shape_cast %558 : vector<2x32xf32> to vector<1x2x32xf32>
    tpu.vector_store %arg10[%c1_172, %c0_173, %c0_174], %572 {strides = array<i32>} : memref<2x2x32xf32, #tpu.memory_space<vmem>>, vector<1x2x32xf32>,
    %c0_175 = arith.constant 0 : index
    %c0_176 = arith.constant 0 : index
    %c0_177 = arith.constant 0 : index
    %573 = vector.load %arg11[%c0_175, %c0_176, %c0_177] : memref<2x2x32xf32, #tpu.memory_space<vmem>>, vector<1x2x32xf32>
    %574 = vector.shape_cast %573 : vector<1x2x32xf32> to vector<2x32xf32>
    %575 = vector.shape_cast %526 : vector<2x32xf32> to vector<1x2x32xf32>
    tpu.vector_store %arg11[%c0_175, %c0_176, %c0_177], %575 {strides = array<i32>} : memref<2x2x32xf32, #tpu.memory_space<vmem>>, vector<1x2x32xf32>,
    %c1_178 = arith.constant 1 : index
    %c0_179 = arith.constant 0 : index
    %c0_180 = arith.constant 0 : index
    %576 = vector.load %arg11[%c1_178, %c0_179, %c0_180] : memref<2x2x32xf32, #tpu.memory_space<vmem>>, vector<1x2x32xf32>
    %577 = vector.shape_cast %576 : vector<1x2x32xf32> to vector<2x32xf32>
    %578 = vector.shape_cast %556 : vector<2x32xf32> to vector<1x2x32xf32>
    tpu.vector_store %arg11[%c1_178, %c0_179, %c0_180], %578 {strides = array<i32>} : memref<2x2x32xf32, #tpu.memory_space<vmem>>, vector<1x2x32xf32>,
    %c0_i32_181 = arith.constant 0 : i32
    %579 = arith.cmpi eq, %arg0, %c0_i32_181 : i32
    %580 = arith.extui %579 : i1 to i32
    %c0_i32_182 = arith.constant 0 : i32
    %581 = arith.cmpi ne, %580, %c0_i32_182 : i32
    scf.if %581 {
      %c0_183 = arith.constant 0 : index
      %c0_184 = arith.constant 0 : index
      %c0_185 = arith.constant 0 : index
      %582 = vector.load %arg8[%c0_183, %c0_184, %c0_185] : memref<2x2x32xf32, #tpu.memory_space<vmem>>, vector<1x2x32xf32>
      %583 = vector.shape_cast %582 : vector<1x2x32xf32> to vector<2x32xf32>
      %584 = vector.shape_cast %528 : vector<2x32xf32> to vector<1x2x32xf32>
      tpu.vector_store %arg8[%c0_183, %c0_184, %c0_185], %584 {strides = array<i32>} : memref<2x2x32xf32, #tpu.memory_space<vmem>>, vector<1x2x32xf32>,
      %c1_186 = arith.constant 1 : index
      %c0_187 = arith.constant 0 : index
      %c0_188 = arith.constant 0 : index
      %585 = vector.load %arg8[%c1_186, %c0_187, %c0_188] : memref<2x2x32xf32, #tpu.memory_space<vmem>>, vector<1x2x32xf32>
      %586 = vector.shape_cast %585 : vector<1x2x32xf32> to vector<2x32xf32>
      %587 = vector.shape_cast %558 : vector<2x32xf32> to vector<1x2x32xf32>
      tpu.vector_store %arg8[%c1_186, %c0_187, %c0_188], %587 {strides = array<i32>} : memref<2x2x32xf32, #tpu.memory_space<vmem>>, vector<1x2x32xf32>,
      %c0_189 = arith.constant 0 : index
      %c0_190 = arith.constant 0 : index
      %c0_191 = arith.constant 0 : index
      %588 = vector.load %arg9[%c0_189, %c0_190, %c0_191] : memref<2x2x32xf32, #tpu.memory_space<vmem>>, vector<1x2x32xf32>
      %589 = vector.shape_cast %588 : vector<1x2x32xf32> to vector<2x32xf32>
      %590 = vector.shape_cast %526 : vector<2x32xf32> to vector<1x2x32xf32>
      tpu.vector_store %arg9[%c0_189, %c0_190, %c0_191], %590 {strides = array<i32>} : memref<2x2x32xf32, #tpu.memory_space<vmem>>, vector<1x2x32xf32>,
      %c1_192 = arith.constant 1 : index
      %c0_193 = arith.constant 0 : index
      %c0_194 = arith.constant 0 : index
      %591 = vector.load %arg9[%c1_192, %c0_193, %c0_194] : memref<2x2x32xf32, #tpu.memory_space<vmem>>, vector<1x2x32xf32>
      %592 = vector.shape_cast %591 : vector<1x2x32xf32> to vector<2x32xf32>
      %593 = vector.shape_cast %556 : vector<2x32xf32> to vector<1x2x32xf32>
      tpu.vector_store %arg9[%c1_192, %c0_193, %c0_194], %593 {strides = array<i32>} : memref<2x2x32xf32, #tpu.memory_space<vmem>>, vector<1x2x32xf32>,
    } else {
    }
    return
  }
  func.func @transform_0(%arg0: i32) -> (i32, i32, i32, i32) {
    %c0_i32 = arith.constant 0 : i32
    %c0_i32_0 = arith.constant 0 : i32
    %c0_i32_1 = arith.constant 0 : i32
    %c0_i32_2 = arith.constant 0 : i32
    return %c0_i32, %arg0, %c0_i32_0, %c0_i32_1 : i32, i32, i32, i32
  }
  func.func @transform_1(%arg0: i32) -> (i32, i32, i32, i32) {
    %c0_i32 = arith.constant 0 : i32
    %0 = arith.subi %c0_i32, %arg0 : i32
    %c1_i32 = arith.constant 1 : i32
    %c0_i32_0 = arith.constant 0 : i32
    %c0_i32_1 = arith.constant 0 : i32
    %c0_i32_2 = arith.constant 0 : i32
    return %c1_i32, %0, %c0_i32_0, %c0_i32_1 : i32, i32, i32, i32
  }
  func.func @transform_2(%arg0: i32) -> (i32, i32, i32) {
    %c0_i32 = arith.constant 0 : i32
    %c0_i32_0 = arith.constant 0 : i32
    %c0_i32_1 = arith.constant 0 : i32
    %c0_i32_2 = arith.constant 0 : i32
    return %c0_i32, %c0_i32_0, %c0_i32_1 : i32, i32, i32
  }
  func.func @transform_3(%arg0: i32) -> (i32, i32, i32) {
    %c0_i32 = arith.constant 0 : i32
    %c0_i32_0 = arith.constant 0 : i32
    %c0_i32_1 = arith.constant 0 : i32
    %c0_i32_2 = arith.constant 0 : i32
    return %c0_i32, %c0_i32_0, %c0_i32_1 : i32, i32, i32
  }
  func.func @transform_4(%arg0: i32) -> (i32, i32, i32) {
    %c0_i32 = arith.constant 0 : i32
    %c0_i32_0 = arith.constant 0 : i32
    %c0_i32_1 = arith.constant 0 : i32
    %c0_i32_2 = arith.constant 0 : i32
    return %c0_i32, %c0_i32_0, %c0_i32_1 : i32, i32, i32
  }
  func.func @transform_5(%arg0: i32) -> (i32, i32, i32) {
    %c0_i32 = arith.constant 0 : i32
    %c0_i32_0 = arith.constant 0 : i32
    %c0_i32_1 = arith.constant 0 : i32
    return %arg0, %c0_i32, %c0_i32_0 : i32, i32, i32
  }
  func.func @transform_6(%arg0: i32) -> (i32, i32, i32) {
    %c0_i32 = arith.constant 0 : i32
    %0 = arith.subi %c0_i32, %arg0 : i32
    %c0_i32_0 = arith.constant 0 : i32
    %c0_i32_1 = arith.constant 0 : i32
    %c0_i32_2 = arith.constant 0 : i32
    return %0, %c0_i32_0, %c0_i32_1 : i32, i32, i32
  }
  func.func @transform_7(%arg0: i32) -> (i32, i32, i32) {
    %c0_i32 = arith.constant 0 : i32
    %c0_i32_0 = arith.constant 0 : i32
    %c0_i32_1 = arith.constant 0 : i32
    %c0_i32_2 = arith.constant 0 : i32
    return %c0_i32, %c0_i32_0, %c0_i32_1 : i32, i32, i32
  }
  func.func @transform_8(%arg0: i32) -> (i32, i32, i32) {
    %c0_i32 = arith.constant 0 : i32
    %c0_i32_0 = arith.constant 0 : i32
    %c0_i32_1 = arith.constant 0 : i32
    %c0_i32_2 = arith.constant 0 : i32
    return %c0_i32, %c0_i32_0, %c0_i32_1 : i32, i32, i32
  }
}

</mosaic_0001>

<bundles_post_ra>
// kernel: tpu_custom_call.1
= control target key start
LH: loop header
LB: loop body
LE: loop exit
PB: predicated region body
PF: predicated region fallthrough
CT: control target
= control target key end

     0   :  { %14 = vsyncpa [#allocation5], 0  ;;  %s3027_s0 = inlined_call_operand.hbm [shape: f32[2,8,2,128], index: 0, kind: input, shape index: {}]   ;;  %s3028_s1 = inlined_call_operand.hbm [shape: f32[2,8,2,128], index: 1, kind: input, shape index: {}]   ;;  %s3029_s2 = inlined_call_operand.vmem [shape: f32[2,2,32], index: 2, kind: input, shape index: {}]   ;;  %s3030_s3 = inlined_call_operand.vmem [shape: f32[2,2,32], index: 3, kind: input, shape index: {}]   ;;  %s3031_s4 = inlined_call_operand.hbm [shape: f32[2,32,128], index: 4, kind: input, shape index: {}]   ;;  %s3032_s5 = inlined_call_operand.hbm [shape: f32[8,2,32], index: 5, kind: output, shape index: {0}]   ;;  %s3033_s6 = inlined_call_operand.hbm [shape: f32[8,2,32], index: 6, kind: output, shape index: {1}]   ;;  %s3034_s7 = inlined_call_operand.hbm [shape: f32[2,2,32], index: 7, kind: output, shape index: {2}]   ;;  %s3035_s8 = inlined_call_operand.hbm [shape: f32[2,2,32], index: 8, kind: output, shape index: {3}]  }
   0x1   :  { %15 = vsyncpa [#allocation8], 0 }
   0x2   :  { %16 = vsyncpa [#allocation6], 0 }
   0x3   :  { %17 = vsyncpa [#allocation12], 0 }
   0x4   :  { %18 = vsyncpa [#allocation15], 0  ;;  %s1886_s29 = scalar_lea.hbm %s3028_s1, 256  ;;  %s2584_s30 = smov [#allocation7]  }
   0x5   :  { %s41_s9 = sshll.u32 %s2584_s30, 4  ;;  %s2585_s10 = smov [#allocation4]   ;;  %s42_s9 = int_to_ptr.vmem [resolvable:$true] %s41_s9 }
   0x6   :  { %s24_s11 = sshll.u32 %s2585_s10, 4  ;;  %s2441_s14 = scalar_lea.hbm %s3028_s1, 512  ;;  %s25_s11 = int_to_ptr.vmem [resolvable:$true] %s24_s11 }
   0x7   :  { %p2418_p0 = scmp.ne.s32.totalorder %s1886_s29, %s2441_s14  ;;  %p2420_p1 = scmp.lt.u32.totalorder %s1886_s29, %s3028_s1 }
   0x8   :  { %p2421_p2 = scmp.lt.u32.totalorder %s2441_s14, %s2441_s14  ;;  %p2423_p4 = scmp.lt.u32.totalorder %s2441_s14, %s1886_s29 }
   0xa   :  { %p2422_p3 = por %p2421_p2, %p2420_p1 }
   0xc   :  { %p2424_p5 = por %p2423_p4, %p2422_p3 }
   0xe   :  { %p2425_p6 = pnand %p2424_p5, %p2418_p0 }
  0x10   :  { %2428 = shalt.err (!%p2425_p6)
}
  0x11   :  { %s2429_s17 = scalar_lea.vmem %s42_s9, 256  ;;  %p2434_p8 = scmp.lt.s32.totalorder %s42_s9, %s42_s9 }
  0x12   :  { %p2430_p7 = scmp.ne.s32.totalorder %s42_s9, %s2429_s17  ;;  %p2435_p9 = scmp.lt.s32.totalorder %s2429_s17, %s2429_s17 }
  0x14   :  { %p2436_p10 = por %p2435_p9, %p2434_p8 }
  0x16   :  { %p2437_p11 = pnand %p2436_p10, %p2430_p7 }
  0x18   :  { %2440 = shalt.err (!%p2437_p11)
}
  0x19   :  { %s2586_s18 = smov 32   ;;  %s2587_s19 = smov 2  }
  0x1a   :  { %47 = dma.hbm_to_vmem [thread:$0]  %s1886_s29, 256, %s42_s9, [#allocation8], %s2586_s18, %s2586_s18, %s2587_s19  }
  0x1b   :  { %s2442_s21 = scalar_lea.hbm %s3027_s0, 256  ;;  %s2444_s26 = scalar_lea.hbm %s3027_s0, 512 }
  0x1c   :  { %p2443_p12 = scmp.ne.s32.totalorder %s3027_s0, %s2442_s21  ;;  %p2445_p13 = scmp.lt.u32.totalorder %s2444_s26, %s2442_s21 }
  0x1d   :  { %p2446_p0 = scmp.lt.u32.totalorder %s2442_s21, %s3027_s0 }
  0x1f   :  { %p2447_p1 = por %p2446_p0, %p2445_p13 }
  0x21   :  { %p2448_p2 = pnand %p2447_p1, %p2443_p12 }
  0x23   :  { %2451 = shalt.err (!%p2448_p2)
}
  0x24   :  { %s2452_s29 = scalar_lea.vmem %s25_s11, 256  ;;  %p2457_p4 = scmp.lt.s32.totalorder %s25_s11, %s25_s11 }
  0x25   :  { %p2453_p3 = scmp.ne.s32.totalorder %s25_s11, %s2452_s29  ;;  %p2458_p5 = scmp.lt.s32.totalorder %s2452_s29, %s2452_s29 }
  0x27   :  { %p2459_p6 = por %p2458_p5, %p2457_p4 }
  0x29   :  { %p2460_p7 = pnand %p2459_p6, %p2453_p3 }
  0x2b   :  { %2463 = shalt.err (!%p2460_p7)
}
  0x2c   :  { %30 = dma.hbm_to_vmem [thread:$0]  %s3027_s0, 256, %s25_s11, [#allocation5], %s2586_s18, %s2586_s18, %s2587_s19  }
  0x2d   :  { %s2588_s10 = smov [#allocation9]   ;;  %s2464_s15 = scalar_lea.hbm %s3031_s4, 1024 }
  0x2e   :  { %s57_s12 = sshll.u32 %s2588_s10, 4  ;;  %p2465_p8 = scmp.ne.s32.totalorder %s3031_s4, %s2464_s15  ;;  %s58_s12 = int_to_ptr.vmem [resolvable:$true] %s57_s12 }
  0x2f   :  { %p2468_p9 = scmp.lt.u32.totalorder %s2464_s15, %s3031_s4 }
  0x31   :  { %p2470_p10 = pnand %p2468_p9, %p2465_p8 }
  0x33   :  { %2473 = shalt.err (!%p2470_p10)
}
  0x34   :  { %s2474_s21 = scalar_lea.vmem %s58_s12, 1024  ;;  %p2479_p12 = scmp.lt.s32.totalorder %s58_s12, %s58_s12 }
  0x35   :  { %p2475_p11 = scmp.ne.s32.totalorder %s58_s12, %s2474_s21  ;;  %p2480_p13 = scmp.lt.s32.totalorder %s2474_s21, %s2474_s21 }
  0x37   :  { %p2481_p0 = por %p2480_p13, %p2479_p12 }
  0x39   :  { %p2482_p1 = pnand %p2481_p0, %p2475_p11 }
  0x3b   :  { %2485 = shalt.err (!%p2482_p1)
}
  0x3c   :  { %s2589_s0 = smov 128   ;;  %s2590_s11 = smov 8  }
  0x3d   :  { %63 = dma.hbm_to_vmem [thread:$0]  %s3031_s4, 1024, %s58_s12, [#allocation8], %s2589_s0, %s2589_s0, %s2590_s11  }
  0x3e   :  { %2574 = dma.done.wait [#allocation5], 256  }
  0x3f   :  { %2575 = vsyncadd [#allocation5], 4294967040 }
  0x40   :  { %2576 = dma.done.wait [#allocation8], 1280  }
  0x41   :  { %2577 = vsyncadd [#allocation8], 4294966016  ;;  %v2591_v0 = vmov 0.0|0.0   ;;  %vm2592_vm0 = vmmov 0   ;;  %v2593_v1 = vmov 0.0   ;;  %v95_v2 = vld [vmem:[#allocation9 + $0x20] sm:$0xff] }
  0x42   :  { %2183 = vmatprep.subr.bf16.mxu1 %v2591_v0  ;;  %2177 = vmatprep.subr.bf16.mxu0 %v2591_v0  ;;  %v96_v3 = vld [vmem:[#allocation9 + $0x28] sm:$0xff]  ;;  %v90_v4 = vld [vmem:[#allocation9] sm:$0xff]  ;;  %vm83_vm1 = vcmask 254976   ;;  %v97_v7 = vld [vmem:[#allocation9 + $0x30] sm:$0xff]  ;;  %vm106_vm2 = vcmask 261120   ;;  %s2596_s9 = smov [#allocation11]  }
  0x43   :  { %2020 = vmatprep.mubr.msk.f32.mxu1 %vm2592_vm0, %v2593_v1  ;;  %2009 = vmatprep.mubr.msk.f32.mxu0 %vm2592_vm0, %v2593_v1  ;;  %v2693_v5 = vpack.c.bf16 %v96_v3, %v95_v2  ;;  %v91_v6 = vld [vmem:[#allocation9 + $0x8] sm:$0xff]  ;;  %v98_v8 = vld [vmem:[#allocation9 + $0x38] sm:$0xff]  ;;  %v92_v10 = vld [vmem:[#allocation9 + $0x10] sm:$0xff]  ;;  %s1835_s10 = sshll.u32 %s2596_s9, 4  ;;  %s2597_s12 = smov [#allocation10]   ;;  %s1836_s10 = int_to_ptr.vmem [resolvable:$true] %s1835_s10 }
  0x44   :  { %v2695_v9 = vpack.c.bf16 %v91_v6, %v90_v4  ;;  %v93_v11 = vld [vmem:[#allocation9 + $0x18] sm:$0xff]  ;;  %v2701_v13 = vpack.c.bf16 %v98_v8, %v97_v7  ;;  %v105_v23 = vld [vmem:[#allocation4] sm:$0x3]  ;;  %v326_v2 = vld [vmem:[#allocation4 + $0x2] sm:$0x3]  ;;  %s1819_s13 = sshll.u32 %s2597_s12, 4  ;;  %p2491_p3 = scmp.lt.s32.totalorder %s1836_s10, %s1836_s10  ;;  %s1820_s13 = int_to_ptr.vmem [resolvable:$true] %s1819_s13 }
  0x45   :  { %v82_v12 = vld [vmem:[%s3029_s2 + $0x2] sm:$0x3]  ;;  %2185 = vmatpush3.bf16.msra.mxu1 %v2693_v5  ;;  %v81_v14 = vld [vmem:[%s3029_s2] sm:$0x3]  ;;  %v2715_v17 = vpack.c.bf16 %v93_v11, %v92_v10  ;;  %v210_v22 = vld [vmem:[#allocation7 + $0xe] sm:$0x3] }
  0x46   :  { %85 = vst.msk [vmem:[#allocation2 + $0x2] sm:$0x3] %vm83_vm1, %v82_v12  ;;  %v87_v15 = vld [vmem:[%s3030_s3 + $0x2] sm:$0x3]  ;;  %v86_v16 = vld [vmem:[%s3030_s3] sm:$0x3]  ;;  %2179 = vmatpush3.bf16.msra.mxu0 %v2695_v9  ;;  %2186 = vmatprep.subr.bf16.mxu1 %v2591_v0 }
  0x47   :  { %84 = vst.msk [vmem:[#allocation2] sm:$0x3] %vm83_vm1, %v81_v14  ;;  %89 = vst.msk [vmem:[#allocation3 + $0x2] sm:$0x3] %vm83_vm1, %v87_v15  ;;  %2180 = vmatprep.subr.bf16.mxu0 %v2591_v0  ;;  %s2594_s2 = smov 64   ;;  %s2595_s3 = smov 96  }
  0x48   :  { %88 = vst.msk [vmem:[#allocation3] sm:$0x3] %vm83_vm1, %v86_v16  ;;  %v425_v60 = vld [vmem:[#allocation7 + $0xc] sm:$0x3]  ;;  %s2598_s14 = smov [#allocation13]   ;;  %s2599_s16 = smov [#allocation14]  }
  0x49   :  { %2188 = vmatpush3.bf16.msra.mxu1 %v2701_v13  ;;  %s1847_s15 = sshll.u32 %s2598_s14, 4  ;;  %s1859_s17 = sshll.u32 %s2599_s16, 4  ;;  %s2961_s15 = int_to_ptr.vmem [resolvable:$true] %s1847_s15  ;;  %s2968_s17 = int_to_ptr.vmem [resolvable:$true] %s1859_s17 }
  0x4a   :  { %2182 = vmatpush3.bf16.msra.mxu0 %v2715_v17  ;;  %2195 = vmatprep.subr.bf16.mxu1 %v2591_v0  ;;  %s2486_s1 = scalar_lea.vmem %s1836_s10, 256 }
  0x4b   :  { %2189 = vmatprep.subr.bf16.mxu0 %v2591_v0  ;;  %p2487_p2 = scmp.ne.s32.totalorder %s1836_s10, %s2486_s1  ;;  %p2492_p4 = scmp.lt.s32.totalorder %s2486_s1, %s2486_s1 }
  0x4d   :  { %v102_v18 = vld [vmem:[#allocation2 + $0x2] sm:$0x3]  ;;  %p2493_p5 = por %p2492_p4, %p2491_p3 }
  0x4e   :  { %2021 = vmatmul.mubr.msk.f32.vlgmr.msra.gmra.mrb[0].mxu1 %vm106_vm2, %v102_v18  ;;  %v99_v19 = vld [vmem:[#allocation2] sm:$0x3]  ;;  %v104_v20 = vld [vmem:[#allocation3 + $0x2] sm:$0x3] }
  0x4f   :  { %2010 = vmatmul.mubr.msk.f32.vlgmr.msra.gmra.mrb[0].mxu0 %vm106_vm2, %v99_v19  ;;  %293 = vrot.lane.b32.xlu1 %v104_v20, %s2586_s18  ;;  %v100_v21 = vld [vmem:[#allocation3] sm:$0x3]  ;;  %p2494_p6 = pnand %p2493_p5, %p2487_p2 }
  0x50   :  { %2197 = vmatpush3.bf16.msra.mxu1 %v2693_v5  ;;  %2191 = vmatpush3.bf16.msra.mxu0 %v2695_v9 }
  0x51   :  { %2198 = vmatprep.subr.bf16.mxu1 %v2591_v0  ;;  %2042 = vmatprep.mubr.msk.f32.mxu1 %vm2592_vm0, %v2593_v1 }
  0x52   :  { %2192 = vmatprep.subr.bf16.mxu0 %v2591_v0  ;;  %2031 = vmatprep.mubr.msk.f32.mxu0 %vm2592_vm0, %v2593_v1 }
  0x53   :  { %189 = vrot.lane.b32.xlu1 %v100_v21, %s2586_s18 }
  0x54   :  { %2200 = vmatpush3.bf16.msra.mxu1 %v2701_v13  ;;  %2194 = vmatpush3.bf16.msra.mxu0 %v2715_v17 }
  0x55   :  { %2207 = vmatprep.subr.bf16.mxu1 %v2591_v0  ;;  %2201 = vmatprep.subr.bf16.mxu0 %v2591_v0 }
  0xc1   :  { %v294_v44 = vpop.permute.xlu1 %293 }
  0xc5   :  { %v190_v46 = vpop.permute.xlu1 %189 }
 0x121   :  { %v280_v24 = vpop.f32.mrb[0].mxu1 }
 0x122   :  { %v284_v25 = vadd.f32 %v280_v24, %v210_v22  ;;  %v2022_v26 = vpop.f32.mrb[1].mxu1  ;;  %v176_v27 = vpop.f32.mrb[0].mxu0 }
 0x123   :  { %v180_v28 = vadd.f32 %v176_v27, %v105_v23  ;;  %v2011_v29 = vpop.f32.mrb[1].mxu0 }
 0x124   :  { %2289 = vtanh.f32 %v284_v25  ;;  %v1892_v32 = vmul.f32 -1.442695, %v284_v25 }
 0x125   :  { %2291 = vtanh.f32 %v180_v28  ;;  %v1890_v33 = vmul.f32 -1.442695, %v180_v28 }
 0x126   :  { %2293 = vpow2.f32 %v1892_v32 }
 0x127   :  { %2295 = vpow2.f32 %v1890_v33 }
 0x12e   :  { %v2290_v30 = vpop.eup %2289 }
 0x12f   :  { %298 = vrot.lane.b32.xlu0 %v2290_v30, %s2594_s2  ;;  %v2292_v31 = vpop.eup %2291 }
 0x130   :  { %v2294_v34 = vpop.eup %2293 }
 0x131   :  { %v288_v35 = vadd.f32 1.0, %v2294_v34  ;;  %v2296_v36 = vpop.eup %2295 }
 0x132   :  { %v184_v37 = vadd.f32 1.0, %v2296_v36 }
 0x133   :  { %194 = vrot.lane.b32.xlu0 %v2292_v31, %s2594_s2  ;;  %2297 = vrcp.f32 %v288_v35 }
 0x134   :  { %2299 = vrcp.f32 %v184_v37 }
 0x13d   :  { %v2298_v38 = vpop.eup %2297 }
 0x13e   :  { %v2300_v41 = vpop.eup %2299  ;;  %v296_v45 = vmul.f32 %v2298_v38, %v294_v44 }
 0x13f   :  { %v192_v49 = vmul.f32 %v2300_v41, %v190_v46 }
 0x1a1   :  { %v299_v39 = vpop.permute.xlu0 %298 }
 0x1a2   :  { %v301_v40 = vmul.f32 %v2298_v38, %v299_v39 }
 0x1a4   :  { %303 = vrot.lane.b32.xlu0 %v301_v40, %s2586_s18 }
 0x1a5   :  { %v195_v42 = vpop.permute.xlu0 %194 }
 0x1a6   :  { %v197_v43 = vmul.f32 %v2300_v41, %v195_v42  ;;  %v536_v42 = vld [vmem:[#allocation4 + $0x4] sm:$0x3] }
 0x1a8   :  { %199 = vrot.lane.b32.xlu1 %v197_v43, %s2586_s18 }
 0x216   :  { %v304_v47 = vpop.permute.xlu0 %303 }
 0x217   :  { %v2745_v48 = vadd.f32 %v304_v47, %v296_v45 }
 0x219   :  { %2301 = vtanh.f32 %v2745_v48 }
 0x21a   :  { %v200_v50 = vpop.permute.xlu1 %199 }
 0x21b   :  { %v2748_v51 = vadd.f32 %v200_v50, %v192_v49 }
 0x21d   :  { %2303 = vtanh.f32 %v2748_v51 }
 0x223   :  { %v2302_v52 = vpop.eup %2301 }
 0x224   :  { %309 = vrot.lane.b32.xlu0 %v2302_v52, %s2594_s2 }
 0x227   :  { %v2304_v53 = vpop.eup %2303 }
 0x228   :  { %205 = vrot.lane.b32.xlu1 %v2304_v53, %s2594_s2 }
 0x296   :  { %v310_v54 = vpop.permute.xlu0 %309 }
 0x297   :  { %v312_v55 = vmul.f32 %v2298_v38, %v310_v54  ;;  %v635_v38 = vld [vmem:[#allocation7 + $0xa] sm:$0x3] }
 0x299   :  { %320 = vrot.lane.b32.xlu0 %v312_v55, %s2586_s18 }
 0x29a   :  { %v206_v56 = vpop.permute.xlu1 %205 }
 0x29b   :  { %v208_v57 = vmul.f32 %v2300_v41, %v206_v56 }
 0x29d   :  { %314 = vrot.lane.b32.xlu1 %v208_v57, %s2586_s18 }
 0x30b   :  { %v321_v58 = vpop.permute.xlu0 %320 }
 0x30c   :  { %324 = vst.msk [vmem:[#allocation11 + $0xe] sm:$0x3] %vm83_vm1, %v321_v58  ;;  %2043 = vmatmul.mubr.msk.f32.vlgmr.msra.gmra.mrb[2].mxu1 %vm106_vm2, %v321_v58 }
 0x30d   :  { %2209 = vmatpush3.bf16.msra.mxu1 %v2693_v5  ;;  %2064 = vmatprep.mubr.msk.f32.mxu1 %vm2592_vm0, %v2593_v1 }
 0x30e   :  { %2210 = vmatprep.subr.bf16.mxu1 %v2591_v0 }
 0x30f   :  { %v315_v59 = vpop.permute.xlu1 %314 }
 0x310   :  { %318 = vst.msk [vmem:[#allocation10] sm:$0x3] %vm83_vm1, %v315_v59  ;;  %2032 = vmatmul.mubr.msk.f32.vlgmr.msra.gmra.mrb[2].mxu0 %vm106_vm2, %v315_v59 }
 0x311   :  { %2203 = vmatpush3.bf16.msra.mxu0 %v2695_v9  ;;  %2212 = vmatpush3.bf16.msra.mxu1 %v2701_v13 }
 0x312   :  { %2204 = vmatprep.subr.bf16.mxu0 %v2591_v0  ;;  %2053 = vmatprep.mubr.msk.f32.mxu0 %vm2592_vm0, %v2593_v1 }
 0x313   :  { %2219 = vmatprep.subr.bf16.mxu1 %v2591_v0 }
 0x315   :  { %2206 = vmatpush3.bf16.msra.mxu0 %v2715_v17 }
 0x316   :  { %2213 = vmatprep.subr.bf16.mxu0 %v2591_v0 }
 0x3df   :  { %v494_v61 = vpop.f32.mrb[2].mxu1 }
 0x3e0   :  { %v498_v62 = vadd.f32 %v494_v61, %v425_v60  ;;  %v2044_v63 = vpop.f32.mrb[3].mxu1 }
 0x3e2   :  { %2305 = vtanh.f32 %v498_v62  ;;  %v1896_v10 = vmul.f32 -1.442695, %v498_v62 }
 0x3e3   :  { %v395_v3 = vpop.f32.mrb[2].mxu0 }
 0x3e4   :  { %v399_v4 = vadd.f32 %v395_v3, %v326_v2  ;;  %v2033_v6 = vpop.f32.mrb[3].mxu0 }
 0x3e6   :  { %2307 = vtanh.f32 %v399_v4  ;;  %v1894_v11 = vmul.f32 -1.442695, %v399_v4 }
 0x3e7   :  { %2309 = vpow2.f32 %v1896_v10 }
 0x3e8   :  { %2311 = vpow2.f32 %v1894_v11 }
 0x3ec   :  { %v2306_v7 = vpop.eup %2305 }
 0x3ed   :  { %508 = vrot.lane.b32.xlu0 %v2306_v7, %s2594_s2 }
 0x3f0   :  { %v2308_v8 = vpop.eup %2307 }
 0x3f1   :  { %409 = vrot.lane.b32.xlu1 %v2308_v8, %s2594_s2  ;;  %v2310_v12 = vpop.eup %2309 }
 0x3f2   :  { %v502_v14 = vadd.f32 1.0, %v2310_v12  ;;  %v2312_v15 = vpop.eup %2311 }
 0x3f3   :  { %v403_v16 = vadd.f32 1.0, %v2312_v15  ;;  %v845_v15 = vld [vmem:[#allocation7 + $0x8] sm:$0x3] }
 0x3f4   :  { %2313 = vrcp.f32 %v502_v14 }
 0x3f5   :  { %2315 = vrcp.f32 %v403_v16 }
 0x3fe   :  { %v2314_v18 = vpop.eup %2313 }
 0x3ff   :  { %v2316_v21 = vpop.eup %2315  ;;  %v506_v24 = vmul.f32 %v2314_v18, %v2745_v48 }
 0x400   :  { %v407_v27 = vmul.f32 %v2316_v21, %v2748_v51 }
 0x45f   :  { %v509_v19 = vpop.permute.xlu0 %508 }
 0x460   :  { %v511_v20 = vmul.f32 %v2314_v18, %v509_v19 }
 0x462   :  { %513 = vrot.lane.b32.xlu0 %v511_v20, %s2586_s18  ;;  %v746_v20 = vld [vmem:[#allocation4 + $0x6] sm:$0x3] }
 0x463   :  { %v410_v22 = vpop.permute.xlu1 %409 }
 0x464   :  { %v412_v23 = vmul.f32 %v2316_v21, %v410_v22 }
 0x466   :  { %414 = vrot.lane.b32.xlu1 %v412_v23, %s2586_s18 }
 0x4d4   :  { %v514_v25 = vpop.permute.xlu0 %513 }
 0x4d5   :  { %v2776_v26 = vadd.f32 %v514_v25, %v506_v24 }
 0x4d7   :  { %2317 = vtanh.f32 %v2776_v26 }
 0x4d8   :  { %v415_v28 = vpop.permute.xlu1 %414 }
 0x4d9   :  { %v2780_v29 = vadd.f32 %v415_v28, %v407_v27 }
 0x4db   :  { %2319 = vtanh.f32 %v2780_v29 }
 0x4e1   :  { %v2318_v30 = vpop.eup %2317 }
 0x4e2   :  { %519 = vrot.lane.b32.xlu0 %v2318_v30, %s2594_s2 }
 0x4e5   :  { %v2320_v31 = vpop.eup %2319 }
 0x4e6   :  { %420 = vrot.lane.b32.xlu1 %v2320_v31, %s2594_s2 }
 0x554   :  { %v520_v32 = vpop.permute.xlu0 %519 }
 0x555   :  { %v522_v33 = vmul.f32 %v2314_v18, %v520_v32 }
 0x557   :  { %530 = vrot.lane.b32.xlu0 %v522_v33, %s2586_s18 }
 0x558   :  { %v421_v34 = vpop.permute.xlu1 %420 }
 0x559   :  { %v423_v35 = vmul.f32 %v2316_v21, %v421_v34 }
 0x55b   :  { %524 = vrot.lane.b32.xlu1 %v423_v35, %s2586_s18 }
 0x5c9   :  { %v531_v36 = vpop.permute.xlu0 %530 }
 0x5ca   :  { %534 = vst.msk [vmem:[#allocation11 + $0xc] sm:$0x3] %vm83_vm1, %v531_v36  ;;  %2065 = vmatmul.mubr.msk.f32.vlgmr.msra.gmra.mrb[4].mxu1 %vm106_vm2, %v531_v36 }
 0x5cb   :  { %2221 = vmatpush3.bf16.msra.mxu1 %v2693_v5  ;;  %2086 = vmatprep.mubr.msk.f32.mxu1 %vm2592_vm0, %v2593_v1 }
 0x5cc   :  { %2222 = vmatprep.subr.bf16.mxu1 %v2591_v0 }
 0x5cd   :  { %v525_v37 = vpop.permute.xlu1 %524 }
 0x5ce   :  { %528 = vst.msk [vmem:[#allocation10 + $0x2] sm:$0x3] %vm83_vm1, %v525_v37  ;;  %2054 = vmatmul.mubr.msk.f32.vlgmr.msra.gmra.mrb[4].mxu0 %vm106_vm2, %v525_v37 }
 0x5cf   :  { %2215 = vmatpush3.bf16.msra.mxu0 %v2695_v9  ;;  %2224 = vmatpush3.bf16.msra.mxu1 %v2701_v13 }
 0x5d0   :  { %2216 = vmatprep.subr.bf16.mxu0 %v2591_v0  ;;  %2075 = vmatprep.mubr.msk.f32.mxu0 %vm2592_vm0, %v2593_v1 }
 0x5d1   :  { %2231 = vmatprep.subr.bf16.mxu1 %v2591_v0 }
 0x5d3   :  { %2218 = vmatpush3.bf16.msra.mxu0 %v2715_v17 }
 0x5d4   :  { %2225 = vmatprep.subr.bf16.mxu0 %v2591_v0 }
 0x69d   :  { %v704_v39 = vpop.f32.mrb[4].mxu1 }
 0x69e   :  { %v708_v40 = vadd.f32 %v704_v39, %v635_v38  ;;  %v2066_v41 = vpop.f32.mrb[5].mxu1 }
 0x6a0   :  { %2321 = vtanh.f32 %v708_v40  ;;  %v1900_v48 = vmul.f32 -1.442695, %v708_v40 }
 0x6a1   :  { %v605_v43 = vpop.f32.mrb[4].mxu0 }
 0x6a2   :  { %v609_v44 = vadd.f32 %v605_v43, %v536_v42  ;;  %v2055_v45 = vpop.f32.mrb[5].mxu0 }
 0x6a4   :  { %2323 = vtanh.f32 %v609_v44  ;;  %v1898_v49 = vmul.f32 -1.442695, %v609_v44 }
 0x6a5   :  { %2325 = vpow2.f32 %v1900_v48 }
 0x6a6   :  { %2327 = vpow2.f32 %v1898_v49 }
 0x6aa   :  { %v2322_v46 = vpop.eup %2321 }
 0x6ab   :  { %718 = vrot.lane.b32.xlu0 %v2322_v46, %s2594_s2 }
 0x6ae   :  { %v2324_v47 = vpop.eup %2323 }
 0x6af   :  { %619 = vrot.lane.b32.xlu1 %v2324_v47, %s2594_s2  ;;  %v2326_v50 = vpop.eup %2325 }
 0x6b0   :  { %v712_v51 = vadd.f32 1.0, %v2326_v50  ;;  %v2328_v52 = vpop.eup %2327 }
 0x6b1   :  { %v613_v53 = vadd.f32 1.0, %v2328_v52  ;;  %v1055_v52 = vld [vmem:[#allocation7 + $0x6] sm:$0x3] }
 0x6b2   :  { %2329 = vrcp.f32 %v712_v51 }
 0x6b3   :  { %2331 = vrcp.f32 %v613_v53 }
 0x6bc   :  { %v2330_v54 = vpop.eup %2329 }
 0x6bd   :  { %v2332_v57 = vpop.eup %2331  ;;  %v716_v60 = vmul.f32 %v2330_v54, %v2776_v26 }
 0x6be   :  { %v617_v63 = vmul.f32 %v2332_v57, %v2780_v29 }
 0x71d   :  { %v719_v55 = vpop.permute.xlu0 %718 }
 0x71e   :  { %v721_v56 = vmul.f32 %v2330_v54, %v719_v55 }
 0x720   :  { %723 = vrot.lane.b32.xlu0 %v721_v56, %s2586_s18  ;;  %v956_v56 = vld [vmem:[#allocation4 + $0x8] sm:$0x3] }
 0x721   :  { %v620_v58 = vpop.permute.xlu1 %619 }
 0x722   :  { %v622_v59 = vmul.f32 %v2332_v57, %v620_v58 }
 0x724   :  { %624 = vrot.lane.b32.xlu1 %v622_v59, %s2586_s18 }
 0x792   :  { %v724_v61 = vpop.permute.xlu0 %723 }
 0x793   :  { %v2808_v62 = vadd.f32 %v724_v61, %v716_v60 }
 0x795   :  { %2333 = vtanh.f32 %v2808_v62 }
 0x796   :  { %v625_v2 = vpop.permute.xlu1 %624 }
 0x797   :  { %v2812_v3 = vadd.f32 %v625_v2, %v617_v63 }
 0x799   :  { %2335 = vtanh.f32 %v2812_v3 }
 0x79f   :  { %v2334_v4 = vpop.eup %2333 }
 0x7a0   :  { %729 = vrot.lane.b32.xlu0 %v2334_v4, %s2594_s2 }
 0x7a3   :  { %v2336_v6 = vpop.eup %2335 }
 0x7a4   :  { %630 = vrot.lane.b32.xlu1 %v2336_v6, %s2594_s2 }
 0x812   :  { %v730_v7 = vpop.permute.xlu0 %729 }
 0x813   :  { %v732_v8 = vmul.f32 %v2330_v54, %v730_v7 }
 0x815   :  { %740 = vrot.lane.b32.xlu0 %v732_v8, %s2586_s18 }
 0x816   :  { %v631_v10 = vpop.permute.xlu1 %630 }
 0x817   :  { %v633_v11 = vmul.f32 %v2332_v57, %v631_v10 }
 0x819   :  { %734 = vrot.lane.b32.xlu1 %v633_v11, %s2586_s18 }
 0x887   :  { %v741_v12 = vpop.permute.xlu0 %740 }
 0x888   :  { %744 = vst.msk [vmem:[#allocation11 + $0xa] sm:$0x3] %vm83_vm1, %v741_v12  ;;  %2087 = vmatmul.mubr.msk.f32.vlgmr.msra.gmra.mrb[6].mxu1 %vm106_vm2, %v741_v12 }
 0x889   :  { %2233 = vmatpush3.bf16.msra.mxu1 %v2693_v5  ;;  %2108 = vmatprep.mubr.msk.f32.mxu1 %vm2592_vm0, %v2593_v1 }
 0x88a   :  { %2234 = vmatprep.subr.bf16.mxu1 %v2591_v0 }
 0x88b   :  { %v735_v14 = vpop.permute.xlu1 %734 }
 0x88c   :  { %738 = vst.msk [vmem:[#allocation10 + $0x4] sm:$0x3] %vm83_vm1, %v735_v14  ;;  %2076 = vmatmul.mubr.msk.f32.vlgmr.msra.gmra.mrb[6].mxu0 %vm106_vm2, %v735_v14 }
 0x88d   :  { %2227 = vmatpush3.bf16.msra.mxu0 %v2695_v9  ;;  %2236 = vmatpush3.bf16.msra.mxu1 %v2701_v13 }
 0x88e   :  { %2228 = vmatprep.subr.bf16.mxu0 %v2591_v0  ;;  %2097 = vmatprep.mubr.msk.f32.mxu0 %vm2592_vm0, %v2593_v1 }
 0x88f   :  { %2243 = vmatprep.subr.bf16.mxu1 %v2591_v0 }
 0x891   :  { %2230 = vmatpush3.bf16.msra.mxu0 %v2715_v17 }
 0x892   :  { %2237 = vmatprep.subr.bf16.mxu0 %v2591_v0 }
 0x95b   :  { %v914_v16 = vpop.f32.mrb[6].mxu1 }
 0x95c   :  { %v918_v18 = vadd.f32 %v914_v16, %v845_v15  ;;  %v2088_v19 = vpop.f32.mrb[7].mxu1 }
 0x95e   :  { %2337 = vtanh.f32 %v918_v18  ;;  %v1904_v26 = vmul.f32 -1.442695, %v918_v18 }
 0x95f   :  { %v815_v21 = vpop.f32.mrb[6].mxu0 }
 0x960   :  { %v819_v22 = vadd.f32 %v815_v21, %v746_v20  ;;  %v2077_v23 = vpop.f32.mrb[7].mxu0 }
 0x962   :  { %2339 = vtanh.f32 %v819_v22  ;;  %v1902_v27 = vmul.f32 -1.442695, %v819_v22 }
 0x963   :  { %2341 = vpow2.f32 %v1904_v26 }
 0x964   :  { %2343 = vpow2.f32 %v1902_v27 }
 0x968   :  { %v2338_v24 = vpop.eup %2337 }
 0x969   :  { %928 = vrot.lane.b32.xlu0 %v2338_v24, %s2594_s2 }
 0x96c   :  { %v2340_v25 = vpop.eup %2339 }
 0x96d   :  { %829 = vrot.lane.b32.xlu1 %v2340_v25, %s2594_s2  ;;  %v2342_v28 = vpop.eup %2341 }
 0x96e   :  { %v922_v29 = vadd.f32 1.0, %v2342_v28  ;;  %v2344_v30 = vpop.eup %2343 }
 0x96f   :  { %v823_v31 = vadd.f32 1.0, %v2344_v30  ;;  %v1265_v30 = vld [vmem:[#allocation7 + $0x4] sm:$0x3] }
 0x970   :  { %2345 = vrcp.f32 %v922_v29 }
 0x971   :  { %2347 = vrcp.f32 %v823_v31 }
 0x97a   :  { %v2346_v32 = vpop.eup %2345 }
 0x97b   :  { %v2348_v35 = vpop.eup %2347  ;;  %v926_v38 = vmul.f32 %v2346_v32, %v2808_v62 }
 0x97c   :  { %v827_v41 = vmul.f32 %v2348_v35, %v2812_v3 }
 0x9db   :  { %v929_v33 = vpop.permute.xlu0 %928 }
 0x9dc   :  { %v931_v34 = vmul.f32 %v2346_v32, %v929_v33 }
 0x9de   :  { %933 = vrot.lane.b32.xlu0 %v931_v34, %s2586_s18  ;;  %v1166_v34 = vld [vmem:[#allocation4 + $0xa] sm:$0x3] }
 0x9df   :  { %v830_v36 = vpop.permute.xlu1 %829 }
 0x9e0   :  { %v832_v37 = vmul.f32 %v2348_v35, %v830_v36 }
 0x9e2   :  { %834 = vrot.lane.b32.xlu1 %v832_v37, %s2586_s18 }
 0xa50   :  { %v934_v39 = vpop.permute.xlu0 %933 }
 0xa51   :  { %v2840_v40 = vadd.f32 %v934_v39, %v926_v38 }
 0xa53   :  { %2349 = vtanh.f32 %v2840_v40 }
 0xa54   :  { %v835_v42 = vpop.permute.xlu1 %834 }
 0xa55   :  { %v2844_v43 = vadd.f32 %v835_v42, %v827_v41 }
 0xa57   :  { %2351 = vtanh.f32 %v2844_v43 }
 0xa5d   :  { %v2350_v44 = vpop.eup %2349 }
 0xa5e   :  { %939 = vrot.lane.b32.xlu0 %v2350_v44, %s2594_s2 }
 0xa61   :  { %v2352_v45 = vpop.eup %2351 }
 0xa62   :  { %840 = vrot.lane.b32.xlu1 %v2352_v45, %s2594_s2 }
 0xad0   :  { %v940_v46 = vpop.permute.xlu0 %939 }
 0xad1   :  { %v942_v47 = vmul.f32 %v2346_v32, %v940_v46 }
 0xad3   :  { %950 = vrot.lane.b32.xlu0 %v942_v47, %s2586_s18 }
 0xad4   :  { %v841_v48 = vpop.permute.xlu1 %840 }
 0xad5   :  { %v843_v49 = vmul.f32 %v2348_v35, %v841_v48 }
 0xad7   :  { %944 = vrot.lane.b32.xlu1 %v843_v49, %s2586_s18 }
 0xb45   :  { %v951_v50 = vpop.permute.xlu0 %950 }
 0xb46   :  { %954 = vst.msk [vmem:[#allocation11 + $0x8] sm:$0x3] %vm83_vm1, %v951_v50  ;;  %2109 = vmatmul.mubr.msk.f32.vlgmr.msra.gmra.mrb[8].mxu1 %vm106_vm2, %v951_v50 }
 0xb47   :  { %2245 = vmatpush3.bf16.msra.mxu1 %v2693_v5  ;;  %2130 = vmatprep.mubr.msk.f32.mxu1 %vm2592_vm0, %v2593_v1 }
 0xb48   :  { %2246 = vmatprep.subr.bf16.mxu1 %v2591_v0 }
 0xb49   :  { %v945_v51 = vpop.permute.xlu1 %944 }
 0xb4a   :  { %948 = vst.msk [vmem:[#allocation10 + $0x6] sm:$0x3] %vm83_vm1, %v945_v51  ;;  %2098 = vmatmul.mubr.msk.f32.vlgmr.msra.gmra.mrb[8].mxu0 %vm106_vm2, %v945_v51 }
 0xb4b   :  { %2239 = vmatpush3.bf16.msra.mxu0 %v2695_v9  ;;  %2248 = vmatpush3.bf16.msra.mxu1 %v2701_v13 }
 0xb4c   :  { %2240 = vmatprep.subr.bf16.mxu0 %v2591_v0  ;;  %2119 = vmatprep.mubr.msk.f32.mxu0 %vm2592_vm0, %v2593_v1 }
 0xb4d   :  { %2255 = vmatprep.subr.bf16.mxu1 %v2591_v0 }
 0xb4f   :  { %2242 = vmatpush3.bf16.msra.mxu0 %v2715_v17 }
 0xb50   :  { %2249 = vmatprep.subr.bf16.mxu0 %v2591_v0 }
 0xc19   :  { %v1124_v53 = vpop.f32.mrb[8].mxu1 }
 0xc1a   :  { %v1128_v54 = vadd.f32 %v1124_v53, %v1055_v52  ;;  %v2110_v55 = vpop.f32.mrb[9].mxu1 }
 0xc1c   :  { %2353 = vtanh.f32 %v1128_v54  ;;  %v1908_v62 = vmul.f32 -1.442695, %v1128_v54 }
 0xc1d   :  { %v1025_v57 = vpop.f32.mrb[8].mxu0 }
 0xc1e   :  { %v1029_v58 = vadd.f32 %v1025_v57, %v956_v56  ;;  %v2099_v59 = vpop.f32.mrb[9].mxu0 }
 0xc20   :  { %2355 = vtanh.f32 %v1029_v58  ;;  %v1906_v63 = vmul.f32 -1.442695, %v1029_v58 }
 0xc21   :  { %2357 = vpow2.f32 %v1908_v62 }
 0xc22   :  { %2359 = vpow2.f32 %v1906_v63 }
 0xc26   :  { %v2354_v60 = vpop.eup %2353 }
 0xc27   :  { %1138 = vrot.lane.b32.xlu0 %v2354_v60, %s2594_s2 }
 0xc2a   :  { %v2356_v61 = vpop.eup %2355 }
 0xc2b   :  { %1039 = vrot.lane.b32.xlu1 %v2356_v61, %s2594_s2  ;;  %v2358_v2 = vpop.eup %2357 }
 0xc2c   :  { %v1132_v3 = vadd.f32 1.0, %v2358_v2  ;;  %v2360_v4 = vpop.eup %2359 }
 0xc2d   :  { %v1033_v6 = vadd.f32 1.0, %v2360_v4 }
 0xc2e   :  { %2361 = vrcp.f32 %v1132_v3 }
 0xc2f   :  { %2363 = vrcp.f32 %v1033_v6 }
 0xc38   :  { %v2362_v7 = vpop.eup %2361 }
 0xc39   :  { %v2364_v11 = vpop.eup %2363  ;;  %v1136_v15 = vmul.f32 %v2362_v7, %v2840_v40 }
 0xc3a   :  { %v1037_v19 = vmul.f32 %v2364_v11, %v2844_v43 }
 0xc99   :  { %v1139_v8 = vpop.permute.xlu0 %1138 }
 0xc9a   :  { %v1141_v10 = vmul.f32 %v2362_v7, %v1139_v8  ;;  %v1376_v8 = vld [vmem:[#allocation4 + $0xc] sm:$0x3] }
 0xc9c   :  { %1143 = vrot.lane.b32.xlu0 %v1141_v10, %s2586_s18 }
 0xc9d   :  { %v1040_v12 = vpop.permute.xlu1 %1039 }
 0xc9e   :  { %v1042_v14 = vmul.f32 %v2364_v11, %v1040_v12 }
 0xca0   :  { %1044 = vrot.lane.b32.xlu1 %v1042_v14, %s2586_s18 }
 0xd0e   :  { %v1144_v16 = vpop.permute.xlu0 %1143 }
 0xd0f   :  { %v2872_v18 = vadd.f32 %v1144_v16, %v1136_v15 }
 0xd11   :  { %2365 = vtanh.f32 %v2872_v18 }
 0xd12   :  { %v1045_v20 = vpop.permute.xlu1 %1044 }
 0xd13   :  { %v2876_v21 = vadd.f32 %v1045_v20, %v1037_v19 }
 0xd15   :  { %2367 = vtanh.f32 %v2876_v21 }
 0xd1b   :  { %v2366_v22 = vpop.eup %2365 }
 0xd1c   :  { %1149 = vrot.lane.b32.xlu0 %v2366_v22, %s2594_s2 }
 0xd1f   :  { %v2368_v23 = vpop.eup %2367 }
 0xd20   :  { %1050 = vrot.lane.b32.xlu1 %v2368_v23, %s2594_s2 }
 0xd8e   :  { %v1150_v24 = vpop.permute.xlu0 %1149 }
 0xd8f   :  { %v1152_v25 = vmul.f32 %v2362_v7, %v1150_v24 }
 0xd91   :  { %1160 = vrot.lane.b32.xlu0 %v1152_v25, %s2586_s18 }
 0xd92   :  { %v1051_v26 = vpop.permute.xlu1 %1050 }
 0xd93   :  { %v1053_v27 = vmul.f32 %v2364_v11, %v1051_v26 }
 0xd95   :  { %1154 = vrot.lane.b32.xlu1 %v1053_v27, %s2586_s18 }
 0xe03   :  { %v1161_v28 = vpop.permute.xlu0 %1160 }
 0xe04   :  { %1164 = vst.msk [vmem:[#allocation11 + $0x6] sm:$0x3] %vm83_vm1, %v1161_v28  ;;  %2131 = vmatmul.mubr.msk.f32.vlgmr.msra.gmra.mrb[10].mxu1 %vm106_vm2, %v1161_v28 }
 0xe05   :  { %2257 = vmatpush3.bf16.msra.mxu1 %v2693_v5  ;;  %2152 = vmatprep.mubr.msk.f32.mxu1 %vm2592_vm0, %v2593_v1 }
 0xe06   :  { %2258 = vmatprep.subr.bf16.mxu1 %v2591_v0 }
 0xe07   :  { %v1155_v29 = vpop.permute.xlu1 %1154 }
 0xe08   :  { %1158 = vst.msk [vmem:[#allocation10 + $0x8] sm:$0x3] %vm83_vm1, %v1155_v29  ;;  %2120 = vmatmul.mubr.msk.f32.vlgmr.msra.gmra.mrb[10].mxu0 %vm106_vm2, %v1155_v29 }
 0xe09   :  { %2251 = vmatpush3.bf16.msra.mxu0 %v2695_v9  ;;  %2260 = vmatpush3.bf16.msra.mxu1 %v2701_v13 }
 0xe0a   :  { %2252 = vmatprep.subr.bf16.mxu0 %v2591_v0  ;;  %2141 = vmatprep.mubr.msk.f32.mxu0 %vm2592_vm0, %v2593_v1 }
 0xe0b   :  { %2267 = vmatprep.subr.bf16.mxu1 %v2591_v0 }
 0xe0d   :  { %2254 = vmatpush3.bf16.msra.mxu0 %v2715_v17 }
 0xe0e   :  { %2261 = vmatprep.subr.bf16.mxu0 %v2591_v0 }
 0xed7   :  { %v1334_v31 = vpop.f32.mrb[10].mxu1 }
 0xed8   :  { %v1338_v32 = vadd.f32 %v1334_v31, %v1265_v30  ;;  %v2132_v33 = vpop.f32.mrb[11].mxu1 }
 0xeda   :  { %2369 = vtanh.f32 %v1338_v32  ;;  %v1912_v40 = vmul.f32 -1.442695, %v1338_v32 }
 0xedb   :  { %v1235_v35 = vpop.f32.mrb[10].mxu0 }
 0xedc   :  { %v1239_v36 = vadd.f32 %v1235_v35, %v1166_v34  ;;  %v2121_v37 = vpop.f32.mrb[11].mxu0 }
 0xede   :  { %2371 = vtanh.f32 %v1239_v36  ;;  %v1910_v41 = vmul.f32 -1.442695, %v1239_v36 }
 0xedf   :  { %2373 = vpow2.f32 %v1912_v40 }
 0xee0   :  { %2375 = vpow2.f32 %v1910_v41 }
 0xee4   :  { %v2370_v38 = vpop.eup %2369 }
 0xee5   :  { %1348 = vrot.lane.b32.xlu0 %v2370_v38, %s2594_s2  ;;  %v1684_v38 = vld [vmem:[#allocation7] sm:$0x3] }
 0xee8   :  { %v2372_v39 = vpop.eup %2371 }
 0xee9   :  { %1249 = vrot.lane.b32.xlu1 %v2372_v39, %s2594_s2  ;;  %v2374_v42 = vpop.eup %2373 }
 0xeea   :  { %v1342_v43 = vadd.f32 1.0, %v2374_v42  ;;  %v2376_v44 = vpop.eup %2375  ;;  %v1586_v42 = vld [vmem:[#allocation4 + $0xe] sm:$0x3] }
 0xeeb   :  { %v1243_v45 = vadd.f32 1.0, %v2376_v44 }
 0xeec   :  { %2377 = vrcp.f32 %v1342_v43 }
 0xeed   :  { %2379 = vrcp.f32 %v1243_v45 }
 0xef6   :  { %v2378_v46 = vpop.eup %2377 }
 0xef7   :  { %v2380_v49 = vpop.eup %2379  ;;  %v1346_v52 = vmul.f32 %v2378_v46, %v2872_v18 }
 0xef8   :  { %v1247_v55 = vmul.f32 %v2380_v49, %v2876_v21 }
 0xf57   :  { %v1349_v47 = vpop.permute.xlu0 %1348 }
 0xf58   :  { %v1351_v48 = vmul.f32 %v2378_v46, %v1349_v47 }
 0xf5a   :  { %1353 = vrot.lane.b32.xlu0 %v1351_v48, %s2586_s18 }
 0xf5b   :  { %v1250_v50 = vpop.permute.xlu1 %1249 }
 0xf5c   :  { %v1252_v51 = vmul.f32 %v2380_v49, %v1250_v50 }
 0xf5e   :  { %1254 = vrot.lane.b32.xlu1 %v1252_v51, %s2586_s18 }
 0xfcc   :  { %v1354_v53 = vpop.permute.xlu0 %1353 }
 0xfcd   :  { %v1356_v54 = vadd.f32 %v1354_v53, %v1346_v52 }
 0xfcf   :  { %2381 = vtanh.f32 %v1356_v54 }
 0xfd0   :  { %v1255_v56 = vpop.permute.xlu1 %1254 }
 0xfd1   :  { %v1257_v57 = vadd.f32 %v1255_v56, %v1247_v55 }
 0xfd3   :  { %2383 = vtanh.f32 %v1257_v57 }
 0xfd9   :  { %v2382_v58 = vpop.eup %2381 }
 0xfda   :  { %1359 = vrot.lane.b32.xlu0 %v2382_v58, %s2594_s2 }
 0xfdd   :  { %v2384_v59 = vpop.eup %2383 }
 0xfde   :  { %1260 = vrot.lane.b32.xlu1 %v2384_v59, %s2594_s2 }
0x104c   :  { %v1360_v60 = vpop.permute.xlu0 %1359 }
0x104d   :  { %v1362_v61 = vmul.f32 %v2378_v46, %v1360_v60 }
0x104f   :  { %1370 = vrot.lane.b32.xlu0 %v1362_v61, %s2586_s18 }
0x1050   :  { %v1261_v62 = vpop.permute.xlu1 %1260 }
0x1051   :  { %v1263_v63 = vmul.f32 %v2380_v49, %v1261_v62 }
0x1053   :  { %1364 = vrot.lane.b32.xlu1 %v1263_v63, %s2586_s18 }
0x10c1   :  { %v1371_v2 = vpop.permute.xlu0 %1370 }
0x10c2   :  { %1374 = vst.msk [vmem:[#allocation11 + $0x4] sm:$0x3] %vm83_vm1, %v1371_v2  ;;  %2153 = vmatmul.mubr.msk.f32.vlgmr.msra.gmra.mrb[12].mxu1 %vm106_vm2, %v1371_v2 }
0x10c3   :  { %2269 = vmatpush3.bf16.msra.mxu1 %v2693_v5  ;;  %2174 = vmatprep.mubr.msk.f32.mxu1 %vm2592_vm0, %v2593_v1  ;;  %v1475_v5 = vld [vmem:[#allocation7 + $0x2] sm:$0x3] }
0x10c4   :  { %2270 = vmatprep.subr.bf16.mxu1 %v2591_v0 }
0x10c5   :  { %v1365_v3 = vpop.permute.xlu1 %1364 }
0x10c6   :  { %1368 = vst.msk [vmem:[#allocation10 + $0xa] sm:$0x3] %vm83_vm1, %v1365_v3  ;;  %2142 = vmatmul.mubr.msk.f32.vlgmr.msra.gmra.mrb[12].mxu0 %vm106_vm2, %v1365_v3 }
0x10c7   :  { %2263 = vmatpush3.bf16.msra.mxu0 %v2695_v9  ;;  %2272 = vmatpush3.bf16.msra.mxu1 %v2701_v13 }
0x10c8   :  { %2264 = vmatprep.subr.bf16.mxu0 %v2591_v0  ;;  %2163 = vmatprep.mubr.msk.f32.mxu0 %vm2592_vm0, %v2593_v1 }
0x10cb   :  { %2266 = vmatpush3.bf16.msra.mxu0 %v2715_v17 }
0x1195   :  { %v1544_v4 = vpop.f32.mrb[12].mxu1 }
0x1196   :  { %v1548_v6 = vadd.f32 %v1544_v4, %v1475_v5  ;;  %v2154_v7 = vpop.f32.mrb[13].mxu1 }
0x1198   :  { %2385 = vtanh.f32 %v1548_v6  ;;  %v1916_v0 = vmul.f32 -1.442695, %v1548_v6 }
0x1199   :  { %v1445_v10 = vpop.f32.mrb[12].mxu0 }
0x119a   :  { %v1449_v11 = vadd.f32 %v1445_v10, %v1376_v8  ;;  %v2143_v12 = vpop.f32.mrb[13].mxu0 }
0x119c   :  { %2387 = vtanh.f32 %v1449_v11  ;;  %v1914_v1 = vmul.f32 -1.442695, %v1449_v11 }
0x119d   :  { %2389 = vpow2.f32 %v1916_v0 }
0x119e   :  { %2391 = vpow2.f32 %v1914_v1 }
0x11a2   :  { %v2386_v9 = vpop.eup %2385 }
0x11a3   :  { %1558 = vrot.lane.b32.xlu0 %v2386_v9, %s2594_s2 }
0x11a6   :  { %v2388_v13 = vpop.eup %2387 }
0x11a7   :  { %1459 = vrot.lane.b32.xlu1 %v2388_v13, %s2594_s2  ;;  %v2390_v17 = vpop.eup %2389 }
0x11a8   :  { %v1552_v14 = vadd.f32 1.0, %v2390_v17  ;;  %v2392_v15 = vpop.eup %2391 }
0x11a9   :  { %v1453_v16 = vadd.f32 1.0, %v2392_v15 }
0x11aa   :  { %2393 = vrcp.f32 %v1552_v14 }
0x11ab   :  { %2395 = vrcp.f32 %v1453_v16 }
0x11b4   :  { %v2394_v18 = vpop.eup %2393 }
0x11b5   :  { %v2396_v21 = vpop.eup %2395  ;;  %v1556_v24 = vmul.f32 %v2394_v18, %v1356_v54 }
0x11b6   :  { %v1457_v27 = vmul.f32 %v2396_v21, %v1257_v57 }
0x1215   :  { %v1559_v19 = vpop.permute.xlu0 %1558 }
0x1216   :  { %v1561_v20 = vmul.f32 %v2394_v18, %v1559_v19 }
0x1218   :  { %1563 = vrot.lane.b32.xlu0 %v1561_v20, %s2586_s18 }
0x1219   :  { %v1460_v22 = vpop.permute.xlu1 %1459 }
0x121a   :  { %v1462_v23 = vmul.f32 %v2396_v21, %v1460_v22 }
0x121c   :  { %1464 = vrot.lane.b32.xlu1 %v1462_v23, %s2586_s18 }
0x128a   :  { %v1564_v25 = vpop.permute.xlu0 %1563 }
0x128b   :  { %v1566_v26 = vadd.f32 %v1564_v25, %v1556_v24 }
0x128d   :  { %2397 = vtanh.f32 %v1566_v26 }
0x128e   :  { %v1465_v28 = vpop.permute.xlu1 %1464 }
0x128f   :  { %v1467_v29 = vadd.f32 %v1465_v28, %v1457_v27 }
0x1291   :  { %2399 = vtanh.f32 %v1467_v29 }
0x1297   :  { %v2398_v30 = vpop.eup %2397 }
0x1298   :  { %1569 = vrot.lane.b32.xlu0 %v2398_v30, %s2594_s2 }
0x129b   :  { %v2400_v31 = vpop.eup %2399 }
0x129c   :  { %1470 = vrot.lane.b32.xlu1 %v2400_v31, %s2594_s2 }
0x130a   :  { %v1570_v32 = vpop.permute.xlu0 %1569 }
0x130b   :  { %v1572_v33 = vmul.f32 %v2394_v18, %v1570_v32 }
0x130d   :  { %1580 = vrot.lane.b32.xlu0 %v1572_v33, %s2586_s18 }
0x130e   :  { %v1471_v34 = vpop.permute.xlu1 %1470 }
0x130f   :  { %v1473_v35 = vmul.f32 %v2396_v21, %v1471_v34 }
0x1311   :  { %1574 = vrot.lane.b32.xlu1 %v1473_v35, %s2586_s18 }
0x137f   :  { %v1581_v36 = vpop.permute.xlu0 %1580 }
0x1380   :  { %1584 = vst.msk [vmem:[#allocation11 + $0x2] sm:$0x3] %vm83_vm1, %v1581_v36  ;;  %2175 = vmatmul.mubr.msk.f32.vlgmr.msra.gmra.mrb[14].mxu1 %vm106_vm2, %v1581_v36 }
0x1383   :  { %v1575_v37 = vpop.permute.xlu1 %1574 }
0x1384   :  { %1578 = vst.msk [vmem:[#allocation10 + $0xc] sm:$0x3] %vm83_vm1, %v1575_v37  ;;  %2164 = vmatmul.mubr.msk.f32.vlgmr.msra.gmra.mrb[14].mxu0 %vm106_vm2, %v1575_v37 }
0x1453   :  { %v1753_v39 = vpop.f32.mrb[14].mxu1 }
0x1454   :  { %v1757_v40 = vadd.f32 %v1753_v39, %v1684_v38  ;;  %v2176_v41 = vpop.f32.mrb[15].mxu1 }
0x1456   :  { %2401 = vtanh.f32 %v1757_v40  ;;  %v1920_v48 = vmul.f32 -1.442695, %v1757_v40 }
0x1457   :  { %v1655_v43 = vpop.f32.mrb[14].mxu0 }
0x1458   :  { %v1659_v44 = vadd.f32 %v1655_v43, %v1586_v42  ;;  %v2165_v45 = vpop.f32.mrb[15].mxu0 }
0x145a   :  { %2403 = vtanh.f32 %v1659_v44  ;;  %v1918_v49 = vmul.f32 -1.442695, %v1659_v44 }
0x145b   :  { %2405 = vpow2.f32 %v1920_v48 }
0x145c   :  { %2407 = vpow2.f32 %v1918_v49 }
0x1460   :  { %v2402_v46 = vpop.eup %2401 }
0x1461   :  { %1767 = vrot.lane.b32.xlu0 %v2402_v46, %s2594_s2 }
0x1464   :  { %v2404_v47 = vpop.eup %2403 }
0x1465   :  { %1669 = vrot.lane.b32.xlu1 %v2404_v47, %s2594_s2  ;;  %v2406_v50 = vpop.eup %2405 }
0x1466   :  { %v1761_v51 = vadd.f32 1.0, %v2406_v50  ;;  %v2408_v52 = vpop.eup %2407 }
0x1467   :  { %v1663_v53 = vadd.f32 1.0, %v2408_v52 }
0x1468   :  { %2409 = vrcp.f32 %v1761_v51 }
0x1469   :  { %2411 = vrcp.f32 %v1663_v53 }
0x1472   :  { %v2410_v54 = vpop.eup %2409 }
0x1473   :  { %v2412_v57 = vpop.eup %2411  ;;  %v1765_v60 = vmul.f32 %v2410_v54, %v1566_v26 }
0x1474   :  { %v1667_v63 = vmul.f32 %v2412_v57, %v1467_v29 }
0x14d3   :  { %v1768_v55 = vpop.permute.xlu0 %1767 }
0x14d4   :  { %v1770_v56 = vmul.f32 %v2410_v54, %v1768_v55 }
0x14d6   :  { %1772 = vrot.lane.b32.xlu0 %v1770_v56, %s2586_s18 }
0x14d7   :  { %v1670_v58 = vpop.permute.xlu1 %1669 }
0x14d8   :  { %v1672_v59 = vmul.f32 %v2412_v57, %v1670_v58 }
0x14da   :  { %1674 = vrot.lane.b32.xlu1 %v1672_v59, %s2586_s18 }
0x1548   :  { %v1773_v61 = vpop.permute.xlu0 %1772 }
0x1549   :  { %v1775_v62 = vadd.f32 %v1773_v61, %v1765_v60 }
0x154b   :  { %2413 = vtanh.f32 %v1775_v62 }
0x154c   :  { %v1675_v2 = vpop.permute.xlu1 %1674 }
0x154d   :  { %v1677_v3 = vadd.f32 %v1675_v2, %v1667_v63 }
0x154f   :  { %2415 = vtanh.f32 %v1677_v3 }
0x1555   :  { %v2414_v5 = vpop.eup %2413 }
0x1556   :  { %1778 = vrot.lane.b32.xlu0 %v2414_v5, %s2594_s2 }
0x1559   :  { %v2416_v4 = vpop.eup %2415 }
0x155a   :  { %1680 = vrot.lane.b32.xlu1 %v2416_v4, %s2594_s2 }
0x15c8   :  { %v1779_v6 = vpop.permute.xlu0 %1778 }
0x15c9   :  { %v1781_v7 = vmul.f32 %v2410_v54, %v1779_v6 }
0x15cb   :  { %1789 = vrot.lane.b32.xlu0 %v1781_v7, %s2586_s18 }
0x15cc   :  { %v1681_v8 = vpop.permute.xlu1 %1680 }
0x15cd   :  { %v1683_v10 = vmul.f32 %v2412_v57, %v1681_v8 }
0x15cf   :  { %1796 = vrot.lane.b32.xlu0 %v1677_v3, %s2595_s3  ;;  %1783 = vrot.lane.b32.xlu1 %v1683_v10, %s2586_s18 }
0x15d3   :  { %1801 = vrot.lane.b32.xlu1 %v1775_v62, %s2595_s3 }
0x163d   :  { %v1790_v11 = vpop.permute.xlu0 %1789 }
0x163e   :  { %1792 = vst.msk [vmem:[#allocation11] sm:$0x3] %vm83_vm1, %v1790_v11  ;;  %1794 = vst.msk [vmem:[#allocation2 + $0x2] sm:$0x3] %vm83_vm1, %v1790_v11 }
0x163f   :  { %1810 = vst.msk [vmem:[#allocation13 + $0x2] sm:$0x3] %vm83_vm1, %v1790_v11 }
0x1640   :  { %2497 = shalt.err (!%p2494_p6)
}
0x1641   :  { %s2498_s0 = scalar_lea.hbm %s3033_s6, 256 }
0x1642   :  { %p2499_p7 = scmp.ne.s32.totalorder %s3033_s6, %s2498_s0  ;;  %p2502_p8 = scmp.lt.u32.totalorder %s2498_s0, %s3033_s6 }
0x1644   :  { %p2504_p9 = pnand %p2502_p8, %p2499_p7 }
0x1646   :  { %2507 = shalt.err (!%p2504_p9)
}
0x1647   :  { %1841 = dma.vmem_to_hbm [thread:$0]  %s1836_s10, 256, %s3033_s6, [#allocation12], %s2586_s18, %s2586_s18, %s2587_s19   ;;  %v1797_v12 = vpop.permute.xlu0 %1796  ;;  %v1784_v9 = vpop.permute.xlu1 %1783 }
0x1648   :  { %1799 = vst.msk [vmem:[#allocation3] sm:$0x3] %vm83_vm1, %v1797_v12  ;;  %1811 = vst.msk [vmem:[#allocation14] sm:$0x3] %vm83_vm1, %v1797_v12  ;;  %s2508_s26 = scalar_lea.vmem %s1820_s13, 256  ;;  %p2513_p11 = scmp.lt.s32.totalorder %s1820_s13, %s1820_s13 }
0x1649   :  { %1787 = vst.msk [vmem:[#allocation10 + $0xe] sm:$0x3] %vm83_vm1, %v1784_v9  ;;  %1793 = vst.msk [vmem:[#allocation2] sm:$0x3] %vm83_vm1, %v1784_v9  ;;  %p2509_p10 = scmp.ne.s32.totalorder %s1820_s13, %s2508_s26  ;;  %p2514_p12 = scmp.lt.s32.totalorder %s2508_s26, %s2508_s26 }
0x164a   :  { %1808 = vst.msk [vmem:[#allocation13] sm:$0x3] %vm83_vm1, %v1784_v9 }
0x164b   :  { %p2515_p13 = por %p2514_p12, %p2513_p11 }
0x164d   :  { %p2516_p0 = pnand %p2515_p13, %p2509_p10 }
0x164f   :  { %2519 = shalt.err (!%p2516_p0)
}
0x1650   :  { %s2520_s28 = scalar_lea.hbm %s3032_s5, 256 }
0x1651   :  { %p2521_p1 = scmp.ne.s32.totalorder %s3032_s5, %s2520_s28  ;;  %p2524_p2 = scmp.lt.u32.totalorder %s2520_s28, %s3032_s5 }
0x1653   :  { %p2526_p3 = pnand %p2524_p2, %p2521_p1 }
0x1655   :  { %2529 = shalt.err (!%p2526_p3)
}
0x1656   :  { %1825 = dma.vmem_to_hbm [thread:$0]  %s1820_s13, 256, %s3032_s5, [#allocation6], %s2586_s18, %s2586_s18, %s2587_s19  }
0x1657   :  { %s2530_s12 = scalar_lea.vmem %s2961_s15, 64  ;;  %p2535_p5 = scmp.lt.s32.totalorder %s2961_s15, %s2961_s15 }
0x1658   :  { %p2531_p4 = scmp.ne.s32.totalorder %s2961_s15, %s2530_s12  ;;  %p2536_p6 = scmp.lt.s32.totalorder %s2530_s12, %s2530_s12 }
0x165a   :  { %p2537_p7 = por %p2536_p6, %p2535_p5 }
0x165c   :  { %p2538_p8 = pnand %p2537_p7, %p2531_p4 }
0x165e   :  { %2541 = shalt.err (!%p2538_p8)
}
0x165f   :  { %s2542_s1 = scalar_lea.hbm %s3034_s7, 64 }
0x1660   :  { %p2543_p9 = scmp.ne.s32.totalorder %s3034_s7, %s2542_s1  ;;  %p2546_p10 = scmp.lt.u32.totalorder %s2542_s1, %s3034_s7 }
0x1662   :  { %p2548_p11 = pnand %p2546_p10, %p2543_p9 }
0x1664   :  { %2551 = shalt.err (!%p2548_p11)
}
0x1665   :  { %1853 = dma.vmem_to_hbm [thread:$0]  %s2961_s15, 64, %s3034_s7, [#allocation12], %s2586_s18, %s2586_s18, %s2587_s19   ;;  %v1802_v13 = vpop.permute.xlu1 %1801 }
0x1666   :  { %1804 = vst.msk [vmem:[#allocation3 + $0x2] sm:$0x3] %vm83_vm1, %v1802_v13  ;;  %1813 = vst.msk [vmem:[#allocation14 + $0x2] sm:$0x3] %vm83_vm1, %v1802_v13  ;;  %s2552_s22 = scalar_lea.vmem %s2968_s17, 64  ;;  %p2557_p13 = scmp.lt.s32.totalorder %s2968_s17, %s2968_s17 }
0x1667   :  { %p2553_p12 = scmp.ne.s32.totalorder %s2968_s17, %s2552_s22  ;;  %p2558_p0 = scmp.lt.s32.totalorder %s2552_s22, %s2552_s22 }
0x1669   :  { %p2559_p1 = por %p2558_p0, %p2557_p13 }
0x166b   :  { %p2560_p2 = pnand %p2559_p1, %p2553_p12 }
0x166d   :  { %2563 = shalt.err (!%p2560_p2)
}
0x166e   :  { %s2564_s24 = scalar_lea.hbm %s3035_s8, 64 }
0x166f   :  { %p2565_p3 = scmp.ne.s32.totalorder %s3035_s8, %s2564_s24  ;;  %p2568_p4 = scmp.lt.u32.totalorder %s2564_s24, %s3035_s8 }
0x1671   :  { %p2570_p5 = pnand %p2568_p4, %p2565_p3 }
0x1673   :  { %2573 = shalt.err (!%p2570_p5)
}
0x1674   :  { %1865 = dma.vmem_to_hbm [thread:$0]  %s2968_s17, 64, %s3035_s8, [#allocation15], %s2586_s18, %s2586_s18, %s2587_s19  }
0x1675   :  { %2578 = dma.done.wait [#allocation6], 256  }
0x1676   :  { %2579 = vsyncadd [#allocation6], 4294967040 }
0x1677   :  { %2580 = dma.done.wait [#allocation12], 320  }
0x1678   :  { %2581 = vsyncadd [#allocation12], 4294966976 }
0x1679   :  { %2582 = dma.done.wait [#allocation15], 64  }
0x167a   :  { %2583 = vsyncadd [#allocation15], 4294967232 }
0x167b   :  { %1878 = vsyncpa [#allocation5], 1 }
0x167c   :  { %1879 = vsyncpa [#allocation8], 1 }
0x167d   :  { %1880 = vsyncpa [#allocation6], 1 }
0x167e   :  { %1881 = vsyncpa [#allocation12], 1 }
0x167f   :  { %1882 = vsyncpa [#allocation15], 1 }

</bundles_post_ra>
